<compile_context>
chip_gen: v6e
topology: v6e:2x2x1
jax: 0.10.0
libtpu: 0.0.40
codegen_flags: <defaults>
</compile_context>

<pallas_src>
import math
from functools import partial

import numpy as np
import jax
import jax.numpy as jnp
from jax import lax
from jax.experimental import pallas as pl
from jax.experimental.pallas import tpu as pltpu


def _round_up(n, m):
    return ((n + m - 1) // m) * m


def _vmem_bytes(ts, bp, i, hp, g):
    """Rough VMEM footprint (bytes) with default 2x pipeline buffering."""
    x_blk = ts * bp * i * 2            # bf16 input block
    y_blk = ts * bp * hp * 4           # f32 output block
    xp = ts * bp * g * 4               # hoisted projection scratch (single copy)
    weights = (i * g + hp * g + hp * hp) * 2 + g * 4   # bf16 weights + f32 bias
    state = 4 * bp * hp * 4            # h0/c0 inputs + hn/cn outputs
    scratch = 2 * bp * hp * 4          # h/c carries
    return 2 * (x_blk + y_blk + weights + state) + xp + scratch


def _pick_time_block(seq_len, bp, i, hp, g, cap=32, budget=24 << 20):
    """Largest divisor TS of seq_len (<= cap) whose VMEM footprint fits `budget`."""
    ts = min(seq_len, cap)
    while ts > 1:
        if seq_len % ts == 0 and _vmem_bytes(ts, bp, i, hp, g) <= budget:
            return ts
        ts -= 1
    return 1


# ------------------------------ fused kernel ---------------------------------
def _gplstm_kernel(x_ref, wih_ref, whh_ref, b_ref, theta_ref, h0_ref, c0_ref,
                   y_ref, hn_ref, cn_ref,
                   h_s, c_s, xp_s,
                   *, ts, batch_pad, hidden, hidden_pad):
    Bp, H, Hp = batch_pad, hidden, hidden_pad
    f32, bf16 = jnp.float32, jnp.bfloat16

    # ---- block 0: fused basis transform of h0 (runs once, negligible cost) ------
    @pl.when(pl.program_id(0) == 0)
    def _init():
        hb = jnp.dot(h0_ref[...].astype(bf16), theta_ref[...],
                     preferred_element_type=f32)[:, :H]          # (Bp, H)
        half = H // 2
        # gsk branch: cos/sin of hx@theta, halves summed then concatenated
        # (interpretation of the reference's undefined `basis` variable).
        gsk = jnp.concatenate(
            [jnp.cos(hb[:, :half]) + jnp.cos(hb[:, half:]),
             jnp.sin(hb[:, :half]) + jnp.sin(hb[:, half:])], axis=-1)
        basis = (jax.nn.sigmoid(hb) + jnp.tanh(hb) + jnp.maximum(hb, 0.0) + gsk)
        basis = basis * (1.0 / math.sqrt(4.0 * H))
        if Hp > H:   # full-width store; padded hidden lanes kept exactly 0
            basis = jnp.concatenate(
                [basis, jnp.zeros((Bp, Hp - H), f32)], axis=-1)
        h_s[...] = basis
        c_s[...] = c0_ref[...].astype(f32)

    # ---- hoisted input projection (+bias): one bf16 MXU matmul per time block ----
    xp_s[...] = (jnp.dot(x_ref[...], wih_ref[...],
                         preferred_element_type=f32) + b_ref[...])

    # ---- serial recurrence over the TS steps of this block ----------------------
    def step(t, carry):
        h, c = carry
        row = pl.multiple_of(t * Bp, 8)                       # sublane-aligned offset
        gates = xp_s[pl.ds(row, Bp), :] + jnp.dot(
            h.astype(bf16), whh_ref[...], preferred_element_type=f32)   # (Bp, 4*Hp)
        i_g = jax.nn.sigmoid(gates[:, 0 * Hp:1 * Hp])          # lane-aligned slices
        f_g = jax.nn.sigmoid(gates[:, 1 * Hp:2 * Hp])
        g_g = jnp.tanh(gates[:, 2 * Hp:3 * Hp])
        o_g = jax.nn.sigmoid(gates[:, 3 * Hp:4 * Hp])
        c = f_g * c + i_g * g_g
        h = o_g * jnp.tanh(c)
        y_ref[pl.ds(row, Bp), :] = h.astype(y_ref.dtype)       # dense aligned store
        return h, c

    unroll = ts if ts <= 8 else next(d for d in (8, 4, 2, 1) if ts % d == 0)
    h, c = lax.fori_loop(0, ts, step, (h_s[...], c_s[...]), unroll=unroll)
    h_s[...] = h
    c_s[...] = c

    # resident outputs: single writeback on the last block only
    @pl.when(pl.program_id(0) == pl.num_programs(0) - 1)
    def _final():
        hn_ref[...] = h.astype(hn_ref.dtype)
        cn_ref[...] = c.astype(cn_ref.dtype)


# ------------------------------- wrapper --------------------------------------
@jax.jit
def fast_gp_lstm_forward(x, hx, cx, theta_mean, w_ih, w_hh, b_ih, b_hh):
    """Eval-mode FastGPLSTM.forward: basis transform of hx fused with the LSTM."""
    S, B, I = x.shape
    H = hx.shape[-1]
    assert H % 2 == 0, "gsk basis requires an even hidden size"
    Bp = _round_up(B, 8)            # sublane-aligned per-step batch rows
    Hp = _round_up(H, 128)          # lane-aligned gates / lane-dense y stores
    G = 4 * Hp
    TS = _pick_time_block(S, Bp, I, Hp, G)
    nb = S // TS
    f32, bf16 = jnp.float32, jnp.bfloat16

    # --- pad / repack parameters: gate g occupies lane block [g*Hp, g*Hp + H) -----
    #     Weights in bf16 (single-pass MXU), f32 accumulation in-kernel.
    wih_t = jnp.transpose(w_ih).astype(f32)       # (I, 4H)
    whh_t = jnp.transpose(w_hh).astype(f32)       # (H, 4H)
    bias = (b_ih + b_hh).astype(f32)              # (4H,)
    wih_p = jnp.zeros((I, G), f32)
    whh_p = jnp.zeros((Hp, G), f32)
    b_p = jnp.zeros((1, G), f32)
    for g in range(4):
        wih_p = wih_p.at[:, g * Hp:g * Hp + H].set(wih_t[:, g * H:(g + 1) * H])
        whh_p = whh_p.at[:H, g * Hp:g * Hp + H].set(whh_t[:, g * H:(g + 1) * H])
        b_p = b_p.at[:, g * Hp:g * Hp + H].set(bias[g * H:(g + 1) * H][None, :])
    wih_p = wih_p.astype(bf16)
    whh_p = whh_p.astype(bf16)
    theta_p = (jnp.zeros((Hp, Hp), f32)
               .at[:H, :H].set(theta_mean.astype(f32)).astype(bf16))
    hx_p = jnp.zeros((Bp, Hp), f32).at[:B, :H].set(hx.reshape(B, H).astype(f32))
    cx_p = jnp.zeros((Bp, Hp), f32).at[:B, :H].set(cx.reshape(B, H).astype(f32))
    x_p = jnp.zeros((S, Bp, I), bf16).at[:, :B, :].set(x.astype(bf16))
    x2d = x_p.reshape(S * Bp, I)

    kernel = partial(_gplstm_kernel, ts=TS, batch_pad=Bp, hidden=H, hidden_pad=Hp)

    vmem_need = _vmem_bytes(TS, Bp, I, Hp, G)
    # Explicit limit: above v5e's 16 MiB scoped default, below v7x's 64 MiB physical.
    vmem_limit = int(min(48 << 20, max(vmem_need + (8 << 20), 32 << 20)))

    grid_spec = pltpu.PrefetchScalarGridSpec(
        num_scalar_prefetch=0,
        grid=(nb,),
        in_specs=[
            pl.BlockSpec((TS * Bp, I), lambda b: (b, 0)),     # x time block (bf16)
            pl.BlockSpec((I, G), lambda b: (0, 0)),           # w_ih^T (bf16, resident)
            pl.BlockSpec((Hp, G), lambda b: (0, 0)),          # w_hh^T (bf16, resident)
            pl.BlockSpec((1, G), lambda b: (0, 0)),           # fused bias (f32)
            pl.BlockSpec((Hp, Hp), lambda b: (0, 0)),         # theta (bf16)
            pl.BlockSpec((Bp, Hp), lambda b: (0, 0)),         # h0
            pl.BlockSpec((Bp, Hp), lambda b: (0, 0)),         # c0
        ],
        out_specs=[
            pl.BlockSpec((TS * Bp, Hp), lambda b: (b, 0)),    # y time block
            pl.BlockSpec((Bp, Hp), lambda b: (0, 0)),         # h_n (resident)
            pl.BlockSpec((Bp, Hp), lambda b: (0, 0)),         # c_n (resident)
        ],
        scratch_shapes=[
            pltpu.VMEM((Bp, Hp), jnp.float32),                # h carry
            pltpu.VMEM((Bp, Hp), jnp.float32),                # c carry
            pltpu.VMEM((TS * Bp, G), jnp.float32),            # hoisted x-projection
        ],
    )

    y2d, hn, cn = pl.pallas_call(
        kernel,
        out_shape=(
            jax.ShapeDtypeStruct((S * Bp, Hp), x.dtype),
            jax.ShapeDtypeStruct((Bp, Hp), x.dtype),
            jax.ShapeDtypeStruct((Bp, Hp), x.dtype),
        ),
        grid_spec=grid_spec,
        compiler_params=pltpu.CompilerParams(
            dimension_semantics=("arbitrary",),               # recurrence is serial
            vmem_limit_bytes=vmem_limit),
    )(x2d, wih_p, whh_p, b_p, theta_p, hx_p, cx_p)

    y = y2d.reshape(S, Bp, Hp)[:, :B, :H]
    h_n = hn[None, :B, :H]
    c_n = cn[None, :B, :H]
    return y, (h_n, c_n)


# ---------------------------- pure-JAX reference ------------------------------
def _ref_forward(x, hx, cx, theta, w_ih, w_hh, b_ih, b_hh):
    hp = jax.lax.Precision.HIGHEST
    S = x.shape[0]
    H = hx.shape[-1]
    hb = jnp.dot(hx[0], theta, precision=hp)
    half = H // 2
    gsk = jnp.concatenate(
        [jnp.cos(hb[:, :half]) + jnp.cos(hb[:, half:]),
         jnp.sin(hb[:, :half]) + jnp.sin(hb[:, half:])], axis=-1)
    h = (jax.nn.sigmoid(hb) + jnp.tanh(hb) + jnp.maximum(hb, 0.0) + gsk) \
        / math.sqrt(4.0 * H)
    c = cx[0]
    bias = b_ih + b_hh
    ys = []
    for t in range(S):
        g = (jnp.dot(x[t], w_ih.T, precision=hp)
             + jnp.dot(h, w_hh.T, precision=hp) + bias)
        i_g = jax.nn.sigmoid(g[:, 0 * H:1 * H])
        f_g = jax.nn.sigmoid(g[:, 1 * H:2 * H])
        g_g = jnp.tanh(g[:, 2 * H:3 * H])
        o_g = jax.nn.sigmoid(g[:, 3 * H:4 * H])
        c = f_g * c + i_g * g_g
        h = o_g * jnp.tanh(c)
        ys.append(h)
    return jnp.stack(ys, 0), (h[None], c[None])


# ---------------------------------- main ---------------------------------------
if __name__ == "__main__":
    S, B, I, H = 8, 4, 16, 32
    key = jax.random.PRNGKey(0)
    ks = jax.random.split(key, 8)

    stdv = 1.0 / math.sqrt(H)
    theta_mean = jax.random.uniform(ks[0], (H, H), jnp.float32, -stdv, stdv)
    w_ih = jax.random.uniform(ks[1], (4 * H, I), jnp.float32, -stdv, stdv)
    w_hh = jax.random.uniform(ks[2], (4 * H, H), jnp.float32, -stdv, stdv)
    b_ih = jax.random.uniform(ks[3], (4 * H,), jnp.float32, -stdv, stdv)
    b_hh = jax.random.uniform(ks[4], (4 * H,), jnp.float32, -stdv, stdv)

    x = jax.random.normal(ks[5], (S, B, I), jnp.float32)
    hx = jax.random.normal(ks[6], (1, B, H), jnp.float32)
    cx = jax.random.normal(ks[7], (1, B, H), jnp.float32)

    y, (h_n, c_n) = fast_gp_lstm_forward(x, hx, cx, theta_mean,
                                         w_ih, w_hh, b_ih, b_hh)
    jax.block_until_ready((y, h_n, c_n))

    # Correctness vs. full-f32 (Precision.HIGHEST) eval-mode reference.
    # Kernel uses bf16 weights/activations with f32 accumulation, so tolerance is 1e-2.
    y_r, (h_r, c_r) = _ref_forward(x, hx, cx, theta_mean, w_ih, w_hh, b_ih, b_hh)
    np.testing.assert_allclose(np.asarray(y), np.asarray(y_r), rtol=1e-2, atol=1e-2)
    np.testing.assert_allclose(np.asarray(h_n), np.asarray(h_r), rtol=1e-2, atol=1e-2)
    np.testing.assert_allclose(np.asarray(c_n), np.asarray(c_r), rtol=1e-2, atol=1e-2)
    print("KERNEL_OK")
</pallas_src>

<mosaic_0001>
module attributes {stable_mosaic.version = 11 : i64} {
  func.func @_gplstm_kernel(%arg0: i32, %arg1: memref<64x16xbf16, #tpu.memory_space<vmem>>, %arg2: memref<16x512xbf16, #tpu.memory_space<vmem>>, %arg3: memref<128x512xbf16, #tpu.memory_space<vmem>>, %arg4: memref<1x512xf32, #tpu.memory_space<vmem>>, %arg5: memref<128x128xbf16, #tpu.memory_space<vmem>>, %arg6: memref<8x128xf32, #tpu.memory_space<vmem>>, %arg7: memref<8x128xf32, #tpu.memory_space<vmem>>, %arg8: memref<64x128xf32, #tpu.memory_space<vmem>>, %arg9: memref<8x128xf32, #tpu.memory_space<vmem>>, %arg10: memref<8x128xf32, #tpu.memory_space<vmem>>, %arg11: memref<8x128xf32, #tpu.memory_space<vmem>>, %arg12: memref<8x128xf32, #tpu.memory_space<vmem>>, %arg13: memref<64x512xf32, #tpu.memory_space<vmem>>) attributes {dimension_semantics = [#tpu.dimension_semantics<arbitrary>], iteration_bounds = array<i64: 1>, scalar_prefetch = 0 : i64, scratch_operands = 3 : i64, tpu.core_type = #tpu.core_type<tc>, window_params = [{transform_indices = @transform_0, window_bounds = array<i64: 64, 16>}, {pipeline_mode = #tpu.pipeline_mode<synchronous>, transform_indices = @transform_1, window_bounds = array<i64: 16, 512>}, {pipeline_mode = #tpu.pipeline_mode<synchronous>, transform_indices = @transform_2, window_bounds = array<i64: 128, 512>}, {pipeline_mode = #tpu.pipeline_mode<synchronous>, transform_indices = @transform_3, window_bounds = array<i64: 1, 512>}, {pipeline_mode = #tpu.pipeline_mode<synchronous>, transform_indices = @transform_4, window_bounds = array<i64: 128, 128>}, {pipeline_mode = #tpu.pipeline_mode<synchronous>, transform_indices = @transform_5, window_bounds = array<i64: 8, 128>}, {pipeline_mode = #tpu.pipeline_mode<synchronous>, transform_indices = @transform_6, window_bounds = array<i64: 8, 128>}, {transform_indices = @transform_7, window_bounds = array<i64: 64, 128>}, {pipeline_mode = #tpu.pipeline_mode<synchronous>, transform_indices = @transform_8, window_bounds = array<i64: 8, 128>}, {pipeline_mode = #tpu.pipeline_mode<synchronous>, transform_indices = @transform_9, window_bounds = array<i64: 8, 128>}]} {
    %c0_i32 = arith.constant 0 : i32
    %0 = arith.cmpi eq, %arg0, %c0_i32 : i32
    %1 = arith.extui %0 : i1 to i32
    %c0_i32_0 = arith.constant 0 : i32
    %2 = arith.cmpi ne, %1, %c0_i32_0 : i32
    scf.if %2 {
      %c0_91 = arith.constant 0 : index
      %c0_92 = arith.constant 0 : index
      %297 = vector.load %arg6[%c0_91, %c0_92] : memref<8x128xf32, #tpu.memory_space<vmem>>, vector<8x128xf32>
      %298 = arith.truncf %297 : vector<8x128xf32> to vector<8x128xbf16>
      %c0_93 = arith.constant 0 : index
      %c0_94 = arith.constant 0 : index
      %299 = vector.load %arg5[%c0_93, %c0_94] : memref<128x128xbf16, #tpu.memory_space<vmem>>, vector<128x128xbf16>
      %cst_95 = arith.constant dense<0.000000e+00> : vector<8x128xf32>
      %300 = tpu.matmul %298, %299, %cst_95 {dimension_numbers = #tpu.dot_dimension_numbers<[1], [0], [0], [1], [0, 0, 1, 1], [], []>} : vector<8x128xbf16>, vector<128x128xbf16>, vector<8x128xf32> -> vector<8x128xf32>
      %301 = vector.extract_strided_slice %300 {offsets = [0, 0], sizes = [8, 32], strides = [1, 1]} : vector<8x128xf32> to vector<8x32xf32>
      %302 = vector.extract_strided_slice %301 {offsets = [0, 0], sizes = [8, 16], strides = [1, 1]} : vector<8x32xf32> to vector<8x16xf32>
      %303 = math.cos %302 : vector<8x16xf32>
      %304 = vector.extract_strided_slice %301 {offsets = [0, 16], sizes = [8, 16], strides = [1, 1]} : vector<8x32xf32> to vector<8x16xf32>
      %305 = math.cos %304 : vector<8x16xf32>
      %306 = arith.addf %303, %305 : vector<8x16xf32>
      %307 = vector.extract_strided_slice %301 {offsets = [0, 0], sizes = [8, 16], strides = [1, 1]} : vector<8x32xf32> to vector<8x16xf32>
      %308 = math.sin %307 : vector<8x16xf32>
      %309 = vector.extract_strided_slice %301 {offsets = [0, 16], sizes = [8, 16], strides = [1, 1]} : vector<8x32xf32> to vector<8x16xf32>
      %310 = math.sin %309 : vector<8x16xf32>
      %311 = arith.addf %308, %310 : vector<8x16xf32>
      %312 = tpu.concatenate %306, %311 in 1 : vector<8x16xf32>, vector<8x16xf32> -> vector<8x32xf32>
      %313 = arith.negf %301 : vector<8x32xf32>
      %314 = math.exp %313 : vector<8x32xf32>
      %cst_96 = arith.constant 1.000000e+00 : f32
      %315 = vector.broadcast %cst_96 : f32 to vector<8x32xf32>
      %316 = arith.addf %315, %314 : vector<8x32xf32>
      %317 = arith.divf %315, %316 : vector<8x32xf32>
      %318 = math.tanh %301 : vector<8x32xf32>
      %319 = arith.addf %317, %318 : vector<8x32xf32>
      %cst_97 = arith.constant 0.000000e+00 : f32
      %320 = vector.broadcast %cst_97 : f32 to vector<8x32xf32>
      %321 = arith.maximumf %301, %320 : vector<8x32xf32>
      %322 = arith.addf %319, %321 : vector<8x32xf32>
      %323 = arith.addf %322, %312 : vector<8x32xf32>
      %cst_98 = arith.constant 0.0883883461 : f32
      %324 = vector.broadcast %cst_98 : f32 to vector<8x32xf32>
      %325 = arith.mulf %323, %324 : vector<8x32xf32>
      %cst_99 = arith.constant 0.000000e+00 : f32
      %326 = vector.broadcast %cst_99 : f32 to vector<8x96xf32>
      %327 = tpu.concatenate %325, %326 in 1 : vector<8x32xf32>, vector<8x96xf32> -> vector<8x128xf32>
      %c0_100 = arith.constant 0 : index
      %c0_101 = arith.constant 0 : index
      %328 = vector.load %arg11[%c0_100, %c0_101] : memref<8x128xf32, #tpu.memory_space<vmem>>, vector<8x128xf32>
      tpu.vector_store %arg11[%c0_100, %c0_101], %327 {strides = array<i32>} : memref<8x128xf32, #tpu.memory_space<vmem>>, vector<8x128xf32>,
      %c0_102 = arith.constant 0 : index
      %c0_103 = arith.constant 0 : index
      %329 = vector.load %arg7[%c0_102, %c0_103] : memref<8x128xf32, #tpu.memory_space<vmem>>, vector<8x128xf32>
      %c0_104 = arith.constant 0 : index
      %c0_105 = arith.constant 0 : index
      %330 = vector.load %arg12[%c0_104, %c0_105] : memref<8x128xf32, #tpu.memory_space<vmem>>, vector<8x128xf32>
      tpu.vector_store %arg12[%c0_104, %c0_105], %329 {strides = array<i32>} : memref<8x128xf32, #tpu.memory_space<vmem>>, vector<8x128xf32>,
    } else {
    }
    %c0 = arith.constant 0 : index
    %c0_1 = arith.constant 0 : index
    %3 = vector.load %arg1[%c0, %c0_1] : memref<64x16xbf16, #tpu.memory_space<vmem>>, vector<64x16xbf16>
    %c0_2 = arith.constant 0 : index
    %c0_3 = arith.constant 0 : index
    %4 = vector.load %arg2[%c0_2, %c0_3] : memref<16x512xbf16, #tpu.memory_space<vmem>>, vector<16x512xbf16>
    %cst = arith.constant dense<0.000000e+00> : vector<64x512xf32>
    %5 = tpu.matmul %3, %4, %cst {dimension_numbers = #tpu.dot_dimension_numbers<[1], [0], [0], [1], [0, 0, 1, 1], [], []>} : vector<64x16xbf16>, vector<16x512xbf16>, vector<64x512xf32> -> vector<64x512xf32>
    %c0_4 = arith.constant 0 : index
    %c0_5 = arith.constant 0 : index
    %6 = vector.load %arg4[%c0_4, %c0_5] : memref<1x512xf32, #tpu.memory_space<vmem>>, vector<1x512xf32>
    %7 = vector.broadcast %6 : vector<1x512xf32> to vector<64x512xf32>
    %8 = arith.addf %5, %7 : vector<64x512xf32>
    %c0_6 = arith.constant 0 : index
    %c0_7 = arith.constant 0 : index
    %9 = vector.load %arg13[%c0_6, %c0_7] : memref<64x512xf32, #tpu.memory_space<vmem>>, vector<64x512xf32>
    tpu.vector_store %arg13[%c0_6, %c0_7], %8 {strides = array<i32>} : memref<64x512xf32, #tpu.memory_space<vmem>>, vector<64x512xf32>,
    %c0_8 = arith.constant 0 : index
    %c0_9 = arith.constant 0 : index
    %10 = vector.load %arg11[%c0_8, %c0_9] : memref<8x128xf32, #tpu.memory_space<vmem>>, vector<8x128xf32>
    %c0_10 = arith.constant 0 : index
    %c0_11 = arith.constant 0 : index
    %11 = vector.load %arg12[%c0_10, %c0_11] : memref<8x128xf32, #tpu.memory_space<vmem>>, vector<8x128xf32>
    %c0_i32_12 = arith.constant 0 : i32
    %c8_i32 = arith.constant 8 : i32
    %12 = arith.muli %c0_i32_12, %c8_i32 : i32
    %13 = tpu.assume_multiple %12, 8 : i32
    %14 = arith.index_cast %13 : i32 to index
    %c0_13 = arith.constant 0 : index
    %15 = vector.load %arg13[%14, %c0_13] : memref<64x512xf32, #tpu.memory_space<vmem>>, vector<8x512xf32>
    %16 = arith.truncf %10 : vector<8x128xf32> to vector<8x128xbf16>
    %c0_14 = arith.constant 0 : index
    %c0_15 = arith.constant 0 : index
    %17 = vector.load %arg3[%c0_14, %c0_15] : memref<128x512xbf16, #tpu.memory_space<vmem>>, vector<128x512xbf16>
    %cst_16 = arith.constant dense<0.000000e+00> : vector<8x512xf32>
    %18 = tpu.matmul %16, %17, %cst_16 {dimension_numbers = #tpu.dot_dimension_numbers<[1], [0], [0], [1], [0, 0, 1, 1], [], []>} : vector<8x128xbf16>, vector<128x512xbf16>, vector<8x512xf32> -> vector<8x512xf32>
    %19 = arith.addf %15, %18 : vector<8x512xf32>
    %20 = vector.extract_strided_slice %19 {offsets = [0, 0], sizes = [8, 128], strides = [1, 1]} : vector<8x512xf32> to vector<8x128xf32>
    %21 = arith.negf %20 : vector<8x128xf32>
    %22 = math.exp %21 : vector<8x128xf32>
    %cst_17 = arith.constant 1.000000e+00 : f32
    %23 = vector.broadcast %cst_17 : f32 to vector<8x128xf32>
    %24 = arith.addf %23, %22 : vector<8x128xf32>
    %25 = arith.divf %23, %24 : vector<8x128xf32>
    %26 = vector.extract_strided_slice %19 {offsets = [0, 128], sizes = [8, 128], strides = [1, 1]} : vector<8x512xf32> to vector<8x128xf32>
    %27 = arith.negf %26 : vector<8x128xf32>
    %28 = math.exp %27 : vector<8x128xf32>
    %cst_18 = arith.constant 1.000000e+00 : f32
    %29 = vector.broadcast %cst_18 : f32 to vector<8x128xf32>
    %30 = arith.addf %29, %28 : vector<8x128xf32>
    %31 = arith.divf %29, %30 : vector<8x128xf32>
    %32 = vector.extract_strided_slice %19 {offsets = [0, 256], sizes = [8, 128], strides = [1, 1]} : vector<8x512xf32> to vector<8x128xf32>
    %33 = math.tanh %32 : vector<8x128xf32>
    %34 = vector.extract_strided_slice %19 {offsets = [0, 384], sizes = [8, 128], strides = [1, 1]} : vector<8x512xf32> to vector<8x128xf32>
    %35 = arith.negf %34 : vector<8x128xf32>
    %36 = math.exp %35 : vector<8x128xf32>
    %cst_19 = arith.constant 1.000000e+00 : f32
    %37 = vector.broadcast %cst_19 : f32 to vector<8x128xf32>
    %38 = arith.addf %37, %36 : vector<8x128xf32>
    %39 = arith.divf %37, %38 : vector<8x128xf32>
    %40 = arith.mulf %31, %11 : vector<8x128xf32>
    %41 = arith.mulf %25, %33 : vector<8x128xf32>
    %42 = arith.addf %40, %41 : vector<8x128xf32>
    %43 = math.tanh %42 : vector<8x128xf32>
    %44 = arith.mulf %39, %43 : vector<8x128xf32>
    %45 = arith.index_cast %13 : i32 to index
    %c0_20 = arith.constant 0 : index
    %46 = vector.load %arg8[%45, %c0_20] : memref<64x128xf32, #tpu.memory_space<vmem>>, vector<8x128xf32>
    tpu.vector_store %arg8[%45, %c0_20], %44 {strides = array<i32>} : memref<64x128xf32, #tpu.memory_space<vmem>>, vector<8x128xf32>,
    %c1_i32 = arith.constant 1 : i32
    %c8_i32_21 = arith.constant 8 : i32
    %47 = arith.muli %c1_i32, %c8_i32_21 : i32
    %48 = tpu.assume_multiple %47, 8 : i32
    %49 = arith.index_cast %48 : i32 to index
    %c0_22 = arith.constant 0 : index
    %50 = vector.load %arg13[%49, %c0_22] : memref<64x512xf32, #tpu.memory_space<vmem>>, vector<8x512xf32>
    %51 = arith.truncf %44 : vector<8x128xf32> to vector<8x128xbf16>
    %c0_23 = arith.constant 0 : index
    %c0_24 = arith.constant 0 : index
    %52 = vector.load %arg3[%c0_23, %c0_24] : memref<128x512xbf16, #tpu.memory_space<vmem>>, vector<128x512xbf16>
    %cst_25 = arith.constant dense<0.000000e+00> : vector<8x512xf32>
    %53 = tpu.matmul %51, %52, %cst_25 {dimension_numbers = #tpu.dot_dimension_numbers<[1], [0], [0], [1], [0, 0, 1, 1], [], []>} : vector<8x128xbf16>, vector<128x512xbf16>, vector<8x512xf32> -> vector<8x512xf32>
    %54 = arith.addf %50, %53 : vector<8x512xf32>
    %55 = vector.extract_strided_slice %54 {offsets = [0, 0], sizes = [8, 128], strides = [1, 1]} : vector<8x512xf32> to vector<8x128xf32>
    %56 = arith.negf %55 : vector<8x128xf32>
    %57 = math.exp %56 : vector<8x128xf32>
    %cst_26 = arith.constant 1.000000e+00 : f32
    %58 = vector.broadcast %cst_26 : f32 to vector<8x128xf32>
    %59 = arith.addf %58, %57 : vector<8x128xf32>
    %60 = arith.divf %58, %59 : vector<8x128xf32>
    %61 = vector.extract_strided_slice %54 {offsets = [0, 128], sizes = [8, 128], strides = [1, 1]} : vector<8x512xf32> to vector<8x128xf32>
    %62 = arith.negf %61 : vector<8x128xf32>
    %63 = math.exp %62 : vector<8x128xf32>
    %cst_27 = arith.constant 1.000000e+00 : f32
    %64 = vector.broadcast %cst_27 : f32 to vector<8x128xf32>
    %65 = arith.addf %64, %63 : vector<8x128xf32>
    %66 = arith.divf %64, %65 : vector<8x128xf32>
    %67 = vector.extract_strided_slice %54 {offsets = [0, 256], sizes = [8, 128], strides = [1, 1]} : vector<8x512xf32> to vector<8x128xf32>
    %68 = math.tanh %67 : vector<8x128xf32>
    %69 = vector.extract_strided_slice %54 {offsets = [0, 384], sizes = [8, 128], strides = [1, 1]} : vector<8x512xf32> to vector<8x128xf32>
    %70 = arith.negf %69 : vector<8x128xf32>
    %71 = math.exp %70 : vector<8x128xf32>
    %cst_28 = arith.constant 1.000000e+00 : f32
    %72 = vector.broadcast %cst_28 : f32 to vector<8x128xf32>
    %73 = arith.addf %72, %71 : vector<8x128xf32>
    %74 = arith.divf %72, %73 : vector<8x128xf32>
    %75 = arith.mulf %66, %42 : vector<8x128xf32>
    %76 = arith.mulf %60, %68 : vector<8x128xf32>
    %77 = arith.addf %75, %76 : vector<8x128xf32>
    %78 = math.tanh %77 : vector<8x128xf32>
    %79 = arith.mulf %74, %78 : vector<8x128xf32>
    %80 = arith.index_cast %48 : i32 to index
    %c0_29 = arith.constant 0 : index
    %81 = vector.load %arg8[%80, %c0_29] : memref<64x128xf32, #tpu.memory_space<vmem>>, vector<8x128xf32>
    tpu.vector_store %arg8[%80, %c0_29], %79 {strides = array<i32>} : memref<64x128xf32, #tpu.memory_space<vmem>>, vector<8x128xf32>,
    %c2_i32 = arith.constant 2 : i32
    %c8_i32_30 = arith.constant 8 : i32
    %82 = arith.muli %c2_i32, %c8_i32_30 : i32
    %83 = tpu.assume_multiple %82, 8 : i32
    %84 = arith.index_cast %83 : i32 to index
    %c0_31 = arith.constant 0 : index
    %85 = vector.load %arg13[%84, %c0_31] : memref<64x512xf32, #tpu.memory_space<vmem>>, vector<8x512xf32>
    %86 = arith.truncf %79 : vector<8x128xf32> to vector<8x128xbf16>
    %c0_32 = arith.constant 0 : index
    %c0_33 = arith.constant 0 : index
    %87 = vector.load %arg3[%c0_32, %c0_33] : memref<128x512xbf16, #tpu.memory_space<vmem>>, vector<128x512xbf16>
    %cst_34 = arith.constant dense<0.000000e+00> : vector<8x512xf32>
    %88 = tpu.matmul %86, %87, %cst_34 {dimension_numbers = #tpu.dot_dimension_numbers<[1], [0], [0], [1], [0, 0, 1, 1], [], []>} : vector<8x128xbf16>, vector<128x512xbf16>, vector<8x512xf32> -> vector<8x512xf32>
    %89 = arith.addf %85, %88 : vector<8x512xf32>
    %90 = vector.extract_strided_slice %89 {offsets = [0, 0], sizes = [8, 128], strides = [1, 1]} : vector<8x512xf32> to vector<8x128xf32>
    %91 = arith.negf %90 : vector<8x128xf32>
    %92 = math.exp %91 : vector<8x128xf32>
    %cst_35 = arith.constant 1.000000e+00 : f32
    %93 = vector.broadcast %cst_35 : f32 to vector<8x128xf32>
    %94 = arith.addf %93, %92 : vector<8x128xf32>
    %95 = arith.divf %93, %94 : vector<8x128xf32>
    %96 = vector.extract_strided_slice %89 {offsets = [0, 128], sizes = [8, 128], strides = [1, 1]} : vector<8x512xf32> to vector<8x128xf32>
    %97 = arith.negf %96 : vector<8x128xf32>
    %98 = math.exp %97 : vector<8x128xf32>
    %cst_36 = arith.constant 1.000000e+00 : f32
    %99 = vector.broadcast %cst_36 : f32 to vector<8x128xf32>
    %100 = arith.addf %99, %98 : vector<8x128xf32>
    %101 = arith.divf %99, %100 : vector<8x128xf32>
    %102 = vector.extract_strided_slice %89 {offsets = [0, 256], sizes = [8, 128], strides = [1, 1]} : vector<8x512xf32> to vector<8x128xf32>
    %103 = math.tanh %102 : vector<8x128xf32>
    %104 = vector.extract_strided_slice %89 {offsets = [0, 384], sizes = [8, 128], strides = [1, 1]} : vector<8x512xf32> to vector<8x128xf32>
    %105 = arith.negf %104 : vector<8x128xf32>
    %106 = math.exp %105 : vector<8x128xf32>
    %cst_37 = arith.constant 1.000000e+00 : f32
    %107 = vector.broadcast %cst_37 : f32 to vector<8x128xf32>
    %108 = arith.addf %107, %106 : vector<8x128xf32>
    %109 = arith.divf %107, %108 : vector<8x128xf32>
    %110 = arith.mulf %101, %77 : vector<8x128xf32>
    %111 = arith.mulf %95, %103 : vector<8x128xf32>
    %112 = arith.addf %110, %111 : vector<8x128xf32>
    %113 = math.tanh %112 : vector<8x128xf32>
    %114 = arith.mulf %109, %113 : vector<8x128xf32>
    %115 = arith.index_cast %83 : i32 to index
    %c0_38 = arith.constant 0 : index
    %116 = vector.load %arg8[%115, %c0_38] : memref<64x128xf32, #tpu.memory_space<vmem>>, vector<8x128xf32>
    tpu.vector_store %arg8[%115, %c0_38], %114 {strides = array<i32>} : memref<64x128xf32, #tpu.memory_space<vmem>>, vector<8x128xf32>,
    %c3_i32 = arith.constant 3 : i32
    %c8_i32_39 = arith.constant 8 : i32
    %117 = arith.muli %c3_i32, %c8_i32_39 : i32
    %118 = tpu.assume_multiple %117, 8 : i32
    %119 = arith.index_cast %118 : i32 to index
    %c0_40 = arith.constant 0 : index
    %120 = vector.load %arg13[%119, %c0_40] : memref<64x512xf32, #tpu.memory_space<vmem>>, vector<8x512xf32>
    %121 = arith.truncf %114 : vector<8x128xf32> to vector<8x128xbf16>
    %c0_41 = arith.constant 0 : index
    %c0_42 = arith.constant 0 : index
    %122 = vector.load %arg3[%c0_41, %c0_42] : memref<128x512xbf16, #tpu.memory_space<vmem>>, vector<128x512xbf16>
    %cst_43 = arith.constant dense<0.000000e+00> : vector<8x512xf32>
    %123 = tpu.matmul %121, %122, %cst_43 {dimension_numbers = #tpu.dot_dimension_numbers<[1], [0], [0], [1], [0, 0, 1, 1], [], []>} : vector<8x128xbf16>, vector<128x512xbf16>, vector<8x512xf32> -> vector<8x512xf32>
    %124 = arith.addf %120, %123 : vector<8x512xf32>
    %125 = vector.extract_strided_slice %124 {offsets = [0, 0], sizes = [8, 128], strides = [1, 1]} : vector<8x512xf32> to vector<8x128xf32>
    %126 = arith.negf %125 : vector<8x128xf32>
    %127 = math.exp %126 : vector<8x128xf32>
    %cst_44 = arith.constant 1.000000e+00 : f32
    %128 = vector.broadcast %cst_44 : f32 to vector<8x128xf32>
    %129 = arith.addf %128, %127 : vector<8x128xf32>
    %130 = arith.divf %128, %129 : vector<8x128xf32>
    %131 = vector.extract_strided_slice %124 {offsets = [0, 128], sizes = [8, 128], strides = [1, 1]} : vector<8x512xf32> to vector<8x128xf32>
    %132 = arith.negf %131 : vector<8x128xf32>
    %133 = math.exp %132 : vector<8x128xf32>
    %cst_45 = arith.constant 1.000000e+00 : f32
    %134 = vector.broadcast %cst_45 : f32 to vector<8x128xf32>
    %135 = arith.addf %134, %133 : vector<8x128xf32>
    %136 = arith.divf %134, %135 : vector<8x128xf32>
    %137 = vector.extract_strided_slice %124 {offsets = [0, 256], sizes = [8, 128], strides = [1, 1]} : vector<8x512xf32> to vector<8x128xf32>
    %138 = math.tanh %137 : vector<8x128xf32>
    %139 = vector.extract_strided_slice %124 {offsets = [0, 384], sizes = [8, 128], strides = [1, 1]} : vector<8x512xf32> to vector<8x128xf32>
    %140 = arith.negf %139 : vector<8x128xf32>
    %141 = math.exp %140 : vector<8x128xf32>
    %cst_46 = arith.constant 1.000000e+00 : f32
    %142 = vector.broadcast %cst_46 : f32 to vector<8x128xf32>
    %143 = arith.addf %142, %141 : vector<8x128xf32>
    %144 = arith.divf %142, %143 : vector<8x128xf32>
    %145 = arith.mulf %136, %112 : vector<8x128xf32>
    %146 = arith.mulf %130, %138 : vector<8x128xf32>
    %147 = arith.addf %145, %146 : vector<8x128xf32>
    %148 = math.tanh %147 : vector<8x128xf32>
    %149 = arith.mulf %144, %148 : vector<8x128xf32>
    %150 = arith.index_cast %118 : i32 to index
    %c0_47 = arith.constant 0 : index
    %151 = vector.load %arg8[%150, %c0_47] : memref<64x128xf32, #tpu.memory_space<vmem>>, vector<8x128xf32>
    tpu.vector_store %arg8[%150, %c0_47], %149 {strides = array<i32>} : memref<64x128xf32, #tpu.memory_space<vmem>>, vector<8x128xf32>,
    %c4_i32 = arith.constant 4 : i32
    %c8_i32_48 = arith.constant 8 : i32
    %152 = arith.muli %c4_i32, %c8_i32_48 : i32
    %153 = tpu.assume_multiple %152, 8 : i32
    %154 = arith.index_cast %153 : i32 to index
    %c0_49 = arith.constant 0 : index
    %155 = vector.load %arg13[%154, %c0_49] : memref<64x512xf32, #tpu.memory_space<vmem>>, vector<8x512xf32>
    %156 = arith.truncf %149 : vector<8x128xf32> to vector<8x128xbf16>
    %c0_50 = arith.constant 0 : index
    %c0_51 = arith.constant 0 : index
    %157 = vector.load %arg3[%c0_50, %c0_51] : memref<128x512xbf16, #tpu.memory_space<vmem>>, vector<128x512xbf16>
    %cst_52 = arith.constant dense<0.000000e+00> : vector<8x512xf32>
    %158 = tpu.matmul %156, %157, %cst_52 {dimension_numbers = #tpu.dot_dimension_numbers<[1], [0], [0], [1], [0, 0, 1, 1], [], []>} : vector<8x128xbf16>, vector<128x512xbf16>, vector<8x512xf32> -> vector<8x512xf32>
    %159 = arith.addf %155, %158 : vector<8x512xf32>
    %160 = vector.extract_strided_slice %159 {offsets = [0, 0], sizes = [8, 128], strides = [1, 1]} : vector<8x512xf32> to vector<8x128xf32>
    %161 = arith.negf %160 : vector<8x128xf32>
    %162 = math.exp %161 : vector<8x128xf32>
    %cst_53 = arith.constant 1.000000e+00 : f32
    %163 = vector.broadcast %cst_53 : f32 to vector<8x128xf32>
    %164 = arith.addf %163, %162 : vector<8x128xf32>
    %165 = arith.divf %163, %164 : vector<8x128xf32>
    %166 = vector.extract_strided_slice %159 {offsets = [0, 128], sizes = [8, 128], strides = [1, 1]} : vector<8x512xf32> to vector<8x128xf32>
    %167 = arith.negf %166 : vector<8x128xf32>
    %168 = math.exp %167 : vector<8x128xf32>
    %cst_54 = arith.constant 1.000000e+00 : f32
    %169 = vector.broadcast %cst_54 : f32 to vector<8x128xf32>
    %170 = arith.addf %169, %168 : vector<8x128xf32>
    %171 = arith.divf %169, %170 : vector<8x128xf32>
    %172 = vector.extract_strided_slice %159 {offsets = [0, 256], sizes = [8, 128], strides = [1, 1]} : vector<8x512xf32> to vector<8x128xf32>
    %173 = math.tanh %172 : vector<8x128xf32>
    %174 = vector.extract_strided_slice %159 {offsets = [0, 384], sizes = [8, 128], strides = [1, 1]} : vector<8x512xf32> to vector<8x128xf32>
    %175 = arith.negf %174 : vector<8x128xf32>
    %176 = math.exp %175 : vector<8x128xf32>
    %cst_55 = arith.constant 1.000000e+00 : f32
    %177 = vector.broadcast %cst_55 : f32 to vector<8x128xf32>
    %178 = arith.addf %177, %176 : vector<8x128xf32>
    %179 = arith.divf %177, %178 : vector<8x128xf32>
    %180 = arith.mulf %171, %147 : vector<8x128xf32>
    %181 = arith.mulf %165, %173 : vector<8x128xf32>
    %182 = arith.addf %180, %181 : vector<8x128xf32>
    %183 = math.tanh %182 : vector<8x128xf32>
    %184 = arith.mulf %179, %183 : vector<8x128xf32>
    %185 = arith.index_cast %153 : i32 to index
    %c0_56 = arith.constant 0 : index
    %186 = vector.load %arg8[%185, %c0_56] : memref<64x128xf32, #tpu.memory_space<vmem>>, vector<8x128xf32>
    tpu.vector_store %arg8[%185, %c0_56], %184 {strides = array<i32>} : memref<64x128xf32, #tpu.memory_space<vmem>>, vector<8x128xf32>,
    %c5_i32 = arith.constant 5 : i32
    %c8_i32_57 = arith.constant 8 : i32
    %187 = arith.muli %c5_i32, %c8_i32_57 : i32
    %188 = tpu.assume_multiple %187, 8 : i32
    %189 = arith.index_cast %188 : i32 to index
    %c0_58 = arith.constant 0 : index
    %190 = vector.load %arg13[%189, %c0_58] : memref<64x512xf32, #tpu.memory_space<vmem>>, vector<8x512xf32>
    %191 = arith.truncf %184 : vector<8x128xf32> to vector<8x128xbf16>
    %c0_59 = arith.constant 0 : index
    %c0_60 = arith.constant 0 : index
    %192 = vector.load %arg3[%c0_59, %c0_60] : memref<128x512xbf16, #tpu.memory_space<vmem>>, vector<128x512xbf16>
    %cst_61 = arith.constant dense<0.000000e+00> : vector<8x512xf32>
    %193 = tpu.matmul %191, %192, %cst_61 {dimension_numbers = #tpu.dot_dimension_numbers<[1], [0], [0], [1], [0, 0, 1, 1], [], []>} : vector<8x128xbf16>, vector<128x512xbf16>, vector<8x512xf32> -> vector<8x512xf32>
    %194 = arith.addf %190, %193 : vector<8x512xf32>
    %195 = vector.extract_strided_slice %194 {offsets = [0, 0], sizes = [8, 128], strides = [1, 1]} : vector<8x512xf32> to vector<8x128xf32>
    %196 = arith.negf %195 : vector<8x128xf32>
    %197 = math.exp %196 : vector<8x128xf32>
    %cst_62 = arith.constant 1.000000e+00 : f32
    %198 = vector.broadcast %cst_62 : f32 to vector<8x128xf32>
    %199 = arith.addf %198, %197 : vector<8x128xf32>
    %200 = arith.divf %198, %199 : vector<8x128xf32>
    %201 = vector.extract_strided_slice %194 {offsets = [0, 128], sizes = [8, 128], strides = [1, 1]} : vector<8x512xf32> to vector<8x128xf32>
    %202 = arith.negf %201 : vector<8x128xf32>
    %203 = math.exp %202 : vector<8x128xf32>
    %cst_63 = arith.constant 1.000000e+00 : f32
    %204 = vector.broadcast %cst_63 : f32 to vector<8x128xf32>
    %205 = arith.addf %204, %203 : vector<8x128xf32>
    %206 = arith.divf %204, %205 : vector<8x128xf32>
    %207 = vector.extract_strided_slice %194 {offsets = [0, 256], sizes = [8, 128], strides = [1, 1]} : vector<8x512xf32> to vector<8x128xf32>
    %208 = math.tanh %207 : vector<8x128xf32>
    %209 = vector.extract_strided_slice %194 {offsets = [0, 384], sizes = [8, 128], strides = [1, 1]} : vector<8x512xf32> to vector<8x128xf32>
    %210 = arith.negf %209 : vector<8x128xf32>
    %211 = math.exp %210 : vector<8x128xf32>
    %cst_64 = arith.constant 1.000000e+00 : f32
    %212 = vector.broadcast %cst_64 : f32 to vector<8x128xf32>
    %213 = arith.addf %212, %211 : vector<8x128xf32>
    %214 = arith.divf %212, %213 : vector<8x128xf32>
    %215 = arith.mulf %206, %182 : vector<8x128xf32>
    %216 = arith.mulf %200, %208 : vector<8x128xf32>
    %217 = arith.addf %215, %216 : vector<8x128xf32>
    %218 = math.tanh %217 : vector<8x128xf32>
    %219 = arith.mulf %214, %218 : vector<8x128xf32>
    %220 = arith.index_cast %188 : i32 to index
    %c0_65 = arith.constant 0 : index
    %221 = vector.load %arg8[%220, %c0_65] : memref<64x128xf32, #tpu.memory_space<vmem>>, vector<8x128xf32>
    tpu.vector_store %arg8[%220, %c0_65], %219 {strides = array<i32>} : memref<64x128xf32, #tpu.memory_space<vmem>>, vector<8x128xf32>,
    %c6_i32 = arith.constant 6 : i32
    %c8_i32_66 = arith.constant 8 : i32
    %222 = arith.muli %c6_i32, %c8_i32_66 : i32
    %223 = tpu.assume_multiple %222, 8 : i32
    %224 = arith.index_cast %223 : i32 to index
    %c0_67 = arith.constant 0 : index
    %225 = vector.load %arg13[%224, %c0_67] : memref<64x512xf32, #tpu.memory_space<vmem>>, vector<8x512xf32>
    %226 = arith.truncf %219 : vector<8x128xf32> to vector<8x128xbf16>
    %c0_68 = arith.constant 0 : index
    %c0_69 = arith.constant 0 : index
    %227 = vector.load %arg3[%c0_68, %c0_69] : memref<128x512xbf16, #tpu.memory_space<vmem>>, vector<128x512xbf16>
    %cst_70 = arith.constant dense<0.000000e+00> : vector<8x512xf32>
    %228 = tpu.matmul %226, %227, %cst_70 {dimension_numbers = #tpu.dot_dimension_numbers<[1], [0], [0], [1], [0, 0, 1, 1], [], []>} : vector<8x128xbf16>, vector<128x512xbf16>, vector<8x512xf32> -> vector<8x512xf32>
    %229 = arith.addf %225, %228 : vector<8x512xf32>
    %230 = vector.extract_strided_slice %229 {offsets = [0, 0], sizes = [8, 128], strides = [1, 1]} : vector<8x512xf32> to vector<8x128xf32>
    %231 = arith.negf %230 : vector<8x128xf32>
    %232 = math.exp %231 : vector<8x128xf32>
    %cst_71 = arith.constant 1.000000e+00 : f32
    %233 = vector.broadcast %cst_71 : f32 to vector<8x128xf32>
    %234 = arith.addf %233, %232 : vector<8x128xf32>
    %235 = arith.divf %233, %234 : vector<8x128xf32>
    %236 = vector.extract_strided_slice %229 {offsets = [0, 128], sizes = [8, 128], strides = [1, 1]} : vector<8x512xf32> to vector<8x128xf32>
    %237 = arith.negf %236 : vector<8x128xf32>
    %238 = math.exp %237 : vector<8x128xf32>
    %cst_72 = arith.constant 1.000000e+00 : f32
    %239 = vector.broadcast %cst_72 : f32 to vector<8x128xf32>
    %240 = arith.addf %239, %238 : vector<8x128xf32>
    %241 = arith.divf %239, %240 : vector<8x128xf32>
    %242 = vector.extract_strided_slice %229 {offsets = [0, 256], sizes = [8, 128], strides = [1, 1]} : vector<8x512xf32> to vector<8x128xf32>
    %243 = math.tanh %242 : vector<8x128xf32>
    %244 = vector.extract_strided_slice %229 {offsets = [0, 384], sizes = [8, 128], strides = [1, 1]} : vector<8x512xf32> to vector<8x128xf32>
    %245 = arith.negf %244 : vector<8x128xf32>
    %246 = math.exp %245 : vector<8x128xf32>
    %cst_73 = arith.constant 1.000000e+00 : f32
    %247 = vector.broadcast %cst_73 : f32 to vector<8x128xf32>
    %248 = arith.addf %247, %246 : vector<8x128xf32>
    %249 = arith.divf %247, %248 : vector<8x128xf32>
    %250 = arith.mulf %241, %217 : vector<8x128xf32>
    %251 = arith.mulf %235, %243 : vector<8x128xf32>
    %252 = arith.addf %250, %251 : vector<8x128xf32>
    %253 = math.tanh %252 : vector<8x128xf32>
    %254 = arith.mulf %249, %253 : vector<8x128xf32>
    %255 = arith.index_cast %223 : i32 to index
    %c0_74 = arith.constant 0 : index
    %256 = vector.load %arg8[%255, %c0_74] : memref<64x128xf32, #tpu.memory_space<vmem>>, vector<8x128xf32>
    tpu.vector_store %arg8[%255, %c0_74], %254 {strides = array<i32>} : memref<64x128xf32, #tpu.memory_space<vmem>>, vector<8x128xf32>,
    %c7_i32 = arith.constant 7 : i32
    %c8_i32_75 = arith.constant 8 : i32
    %257 = arith.muli %c7_i32, %c8_i32_75 : i32
    %258 = tpu.assume_multiple %257, 8 : i32
    %259 = arith.index_cast %258 : i32 to index
    %c0_76 = arith.constant 0 : index
    %260 = vector.load %arg13[%259, %c0_76] : memref<64x512xf32, #tpu.memory_space<vmem>>, vector<8x512xf32>
    %261 = arith.truncf %254 : vector<8x128xf32> to vector<8x128xbf16>
    %c0_77 = arith.constant 0 : index
    %c0_78 = arith.constant 0 : index
    %262 = vector.load %arg3[%c0_77, %c0_78] : memref<128x512xbf16, #tpu.memory_space<vmem>>, vector<128x512xbf16>
    %cst_79 = arith.constant dense<0.000000e+00> : vector<8x512xf32>
    %263 = tpu.matmul %261, %262, %cst_79 {dimension_numbers = #tpu.dot_dimension_numbers<[1], [0], [0], [1], [0, 0, 1, 1], [], []>} : vector<8x128xbf16>, vector<128x512xbf16>, vector<8x512xf32> -> vector<8x512xf32>
    %264 = arith.addf %260, %263 : vector<8x512xf32>
    %265 = vector.extract_strided_slice %264 {offsets = [0, 0], sizes = [8, 128], strides = [1, 1]} : vector<8x512xf32> to vector<8x128xf32>
    %266 = arith.negf %265 : vector<8x128xf32>
    %267 = math.exp %266 : vector<8x128xf32>
    %cst_80 = arith.constant 1.000000e+00 : f32
    %268 = vector.broadcast %cst_80 : f32 to vector<8x128xf32>
    %269 = arith.addf %268, %267 : vector<8x128xf32>
    %270 = arith.divf %268, %269 : vector<8x128xf32>
    %271 = vector.extract_strided_slice %264 {offsets = [0, 128], sizes = [8, 128], strides = [1, 1]} : vector<8x512xf32> to vector<8x128xf32>
    %272 = arith.negf %271 : vector<8x128xf32>
    %273 = math.exp %272 : vector<8x128xf32>
    %cst_81 = arith.constant 1.000000e+00 : f32
    %274 = vector.broadcast %cst_81 : f32 to vector<8x128xf32>
    %275 = arith.addf %274, %273 : vector<8x128xf32>
    %276 = arith.divf %274, %275 : vector<8x128xf32>
    %277 = vector.extract_strided_slice %264 {offsets = [0, 256], sizes = [8, 128], strides = [1, 1]} : vector<8x512xf32> to vector<8x128xf32>
    %278 = math.tanh %277 : vector<8x128xf32>
    %279 = vector.extract_strided_slice %264 {offsets = [0, 384], sizes = [8, 128], strides = [1, 1]} : vector<8x512xf32> to vector<8x128xf32>
    %280 = arith.negf %279 : vector<8x128xf32>
    %281 = math.exp %280 : vector<8x128xf32>
    %cst_82 = arith.constant 1.000000e+00 : f32
    %282 = vector.broadcast %cst_82 : f32 to vector<8x128xf32>
    %283 = arith.addf %282, %281 : vector<8x128xf32>
    %284 = arith.divf %282, %283 : vector<8x128xf32>
    %285 = arith.mulf %276, %252 : vector<8x128xf32>
    %286 = arith.mulf %270, %278 : vector<8x128xf32>
    %287 = arith.addf %285, %286 : vector<8x128xf32>
    %288 = math.tanh %287 : vector<8x128xf32>
    %289 = arith.mulf %284, %288 : vector<8x128xf32>
    %290 = arith.index_cast %258 : i32 to index
    %c0_83 = arith.constant 0 : index
    %291 = vector.load %arg8[%290, %c0_83] : memref<64x128xf32, #tpu.memory_space<vmem>>, vector<8x128xf32>
    tpu.vector_store %arg8[%290, %c0_83], %289 {strides = array<i32>} : memref<64x128xf32, #tpu.memory_space<vmem>>, vector<8x128xf32>,
    %c8_i32_84 = arith.constant 8 : i32
    %c0_85 = arith.constant 0 : index
    %c0_86 = arith.constant 0 : index
    %292 = vector.load %arg11[%c0_85, %c0_86] : memref<8x128xf32, #tpu.memory_space<vmem>>, vector<8x128xf32>
    tpu.vector_store %arg11[%c0_85, %c0_86], %289 {strides = array<i32>} : memref<8x128xf32, #tpu.memory_space<vmem>>, vector<8x128xf32>,
    %c0_87 = arith.constant 0 : index
    %c0_88 = arith.constant 0 : index
    %293 = vector.load %arg12[%c0_87, %c0_88] : memref<8x128xf32, #tpu.memory_space<vmem>>, vector<8x128xf32>
    tpu.vector_store %arg12[%c0_87, %c0_88], %287 {strides = array<i32>} : memref<8x128xf32, #tpu.memory_space<vmem>>, vector<8x128xf32>,
    %c0_i32_89 = arith.constant 0 : i32
    %294 = arith.cmpi eq, %arg0, %c0_i32_89 : i32
    %295 = arith.extui %294 : i1 to i32
    %c0_i32_90 = arith.constant 0 : i32
    %296 = arith.cmpi ne, %295, %c0_i32_90 : i32
    scf.if %296 {
      %c0_91 = arith.constant 0 : index
      %c0_92 = arith.constant 0 : index
      %297 = vector.load %arg9[%c0_91, %c0_92] : memref<8x128xf32, #tpu.memory_space<vmem>>, vector<8x128xf32>
      tpu.vector_store %arg9[%c0_91, %c0_92], %289 {strides = array<i32>} : memref<8x128xf32, #tpu.memory_space<vmem>>, vector<8x128xf32>,
      %c0_93 = arith.constant 0 : index
      %c0_94 = arith.constant 0 : index
      %298 = vector.load %arg10[%c0_93, %c0_94] : memref<8x128xf32, #tpu.memory_space<vmem>>, vector<8x128xf32>
      tpu.vector_store %arg10[%c0_93, %c0_94], %287 {strides = array<i32>} : memref<8x128xf32, #tpu.memory_space<vmem>>, vector<8x128xf32>,
    } else {
    }
    return
  }
  func.func @transform_0(%arg0: i32) -> (i32, i32) {
    %c0_i32 = arith.constant 0 : i32
    %c0_i32_0 = arith.constant 0 : i32
    return %arg0, %c0_i32 : i32, i32
  }
  func.func @transform_1(%arg0: i32) -> (i32, i32) {
    %c0_i32 = arith.constant 0 : i32
    %c0_i32_0 = arith.constant 0 : i32
    %c0_i32_1 = arith.constant 0 : i32
    return %c0_i32, %c0_i32_0 : i32, i32
  }
  func.func @transform_2(%arg0: i32) -> (i32, i32) {
    %c0_i32 = arith.constant 0 : i32
    %c0_i32_0 = arith.constant 0 : i32
    %c0_i32_1 = arith.constant 0 : i32
    return %c0_i32, %c0_i32_0 : i32, i32
  }
  func.func @transform_3(%arg0: i32) -> (i32, i32) {
    %c0_i32 = arith.constant 0 : i32
    %c0_i32_0 = arith.constant 0 : i32
    %c0_i32_1 = arith.constant 0 : i32
    return %c0_i32, %c0_i32_0 : i32, i32
  }
  func.func @transform_4(%arg0: i32) -> (i32, i32) {
    %c0_i32 = arith.constant 0 : i32
    %c0_i32_0 = arith.constant 0 : i32
    %c0_i32_1 = arith.constant 0 : i32
    return %c0_i32, %c0_i32_0 : i32, i32
  }
  func.func @transform_5(%arg0: i32) -> (i32, i32) {
    %c0_i32 = arith.constant 0 : i32
    %c0_i32_0 = arith.constant 0 : i32
    %c0_i32_1 = arith.constant 0 : i32
    return %c0_i32, %c0_i32_0 : i32, i32
  }
  func.func @transform_6(%arg0: i32) -> (i32, i32) {
    %c0_i32 = arith.constant 0 : i32
    %c0_i32_0 = arith.constant 0 : i32
    %c0_i32_1 = arith.constant 0 : i32
    return %c0_i32, %c0_i32_0 : i32, i32
  }
  func.func @transform_7(%arg0: i32) -> (i32, i32) {
    %c0_i32 = arith.constant 0 : i32
    %c0_i32_0 = arith.constant 0 : i32
    return %arg0, %c0_i32 : i32, i32
  }
  func.func @transform_8(%arg0: i32) -> (i32, i32) {
    %c0_i32 = arith.constant 0 : i32
    %c0_i32_0 = arith.constant 0 : i32
    %c0_i32_1 = arith.constant 0 : i32
    return %c0_i32, %c0_i32_0 : i32, i32
  }
  func.func @transform_9(%arg0: i32) -> (i32, i32) {
    %c0_i32 = arith.constant 0 : i32
    %c0_i32_0 = arith.constant 0 : i32
    %c0_i32_1 = arith.constant 0 : i32
    return %c0_i32, %c0_i32_0 : i32, i32
  }
}

</mosaic_0001>

<bundles_post_ra>
// kernel: fast_gp_lstm_forward.1
= control target key start
LH: loop header
LB: loop body
LE: loop exit
PB: predicated region body
PF: predicated region fallthrough
CT: control target
= control target key end

     0   :  { %v3790_v0 = vmov 0.0   ;;  %vm3791_vm0 = vmmov 0   ;;  %v3792_v25 = vmov 683565275   ;;  %v3793_v27 = vmov 2475754826   ;;  %s4749_s4 = inlined_call_operand.vmem [shape: bf16[128,128], index: 4, kind: input, shape index: {}]   ;;  %s4750_s5 = inlined_call_operand.vmem [shape: f32[8,128], index: 5, kind: input, shape index: {}]   ;;  %s4751_s1 = inlined_call_operand.vmem [shape: bf16[16,512], index: 1, kind: input, shape index: {}]   ;;  %s4752_s0 = inlined_call_operand.vmem [shape: bf16[64,16], index: 0, kind: input, shape index: {}]   ;;  %s4753_s2 = inlined_call_operand.vmem [shape: bf16[128,512], index: 2, kind: input, shape index: {}]   ;;  %s4754_s3 = inlined_call_operand.vmem [shape: f32[1,512], index: 3, kind: input, shape index: {}]   ;;  %s4755_s6 = inlined_call_operand.vmem [shape: f32[8,128], index: 6, kind: input, shape index: {}]   ;;  %s4756_s7 = inlined_call_operand.vmem [shape: f32[64,128], index: 7, kind: output, shape index: {0}]   ;;  %s4757_s9 = inlined_call_operand.vmem [shape: f32[8,128], index: 9, kind: output, shape index: {2}]   ;;  %s4758_s8 = inlined_call_operand.vmem [shape: f32[8,128], index: 8, kind: output, shape index: {1}]  }
   0x1   :  { %3503 = vmatprep.subr.bf16.mxu0 %v3790_v0  ;;  %v3538_v1 = vld [vmem:[%s4749_s4 + $0x38] sm:$0xff]   ;;  %3519 = vmatprep.mubr.msk.bf16.mxu0 %vm3791_vm0, %v3790_v0  ;;  %v3539_v2 = vld [vmem:[%s4749_s4 + $0x30] sm:$0xff]   ;;  %v3540_v3 = vld [vmem:[%s4749_s4 + $0x28] sm:$0xff]   ;;  %v3794_v30 = vmov 2131351028   ;;  %vm361_vm12 = vcmask 130048  }
   0x2   :  { %3504 = vmatpush3.bf16.msra.mxu0 %v3538_v1  ;;  %v3541_v4 = vld [vmem:[%s4749_s4 + $0x20] sm:$0xff]   ;;  %v3542_v5 = vld [vmem:[%s4749_s4 + $0x18] sm:$0xff]   ;;  %v3543_v6 = vld [vmem:[%s4749_s4 + $0x10] sm:$0xff]   ;;  %v3795_v33 = vmov 2102212464   ;;  %s3800_s11 = smov 16  }
   0x3   :  { %3505 = vmatprep.subr.bf16.mxu0 %v3790_v0  ;;  %v3544_v7 = vld [vmem:[%s4749_s4 + $0x8] sm:$0xff]   ;;  %v3545_v8 = vld [vmem:[%s4749_s4] sm:$0xff]   ;;  %v3796_v36 = vmov 920167782   ;;  %v3797_v39 = vmov 1326507024  }
   0x4   :  { %v34_v9 = vld [vmem:[%s4750_s5] sm:$0xff] }
   0x5   :  { %v35_v10 = vpack.c.bf16 %v34_v9, %v34_v9 }
   0x6   :  { %3506 = vmatpush3.bf16.msra.mxu0 %v3539_v2 }
   0x7   :  { %3507 = vmatprep.subr.bf16.mxu0 %v3790_v0 }
   0xa   :  { %3508 = vmatpush3.bf16.msra.mxu0 %v3540_v3 }
   0xb   :  { %3509 = vmatprep.subr.bf16.mxu0 %v3790_v0 }
   0xe   :  { %3510 = vmatpush3.bf16.msra.mxu0 %v3541_v4 }
   0xf   :  { %3511 = vmatprep.subr.bf16.mxu0 %v3790_v0 }
  0x12   :  { %3512 = vmatpush3.bf16.msra.mxu0 %v3542_v5 }
  0x13   :  { %3513 = vmatprep.subr.bf16.mxu0 %v3790_v0 }
  0x16   :  { %3514 = vmatpush3.bf16.msra.mxu0 %v3543_v6 }
  0x17   :  { %3515 = vmatprep.subr.bf16.mxu0 %v3790_v0 }
  0x1a   :  { %3516 = vmatpush3.bf16.msra.mxu0 %v3544_v7 }
  0x1b   :  { %3517 = vmatprep.subr.bf16.mxu0 %v3790_v0 }
  0x1e   :  { %3518 = vmatpush3.bf16.msra.mxu0 %v3545_v8 }
  0x21   :  { %3520 = vmatmul.mubr.bf16.vlgmr.msra.gmra.mxu0 %v35_v10 }
  0xe1   :  { %v3878_v11 = vpop.f32.mrf.mxu0 }
  0xe2   :  { %v143_v12 = vand.u32 2139095040, %v3878_v11  ;;  %v140_v19 = vand.u32 2147483647, %v3878_v11  ;;  %vm142_vm8 = vcmp.lt.s32.totalorder %v3878_v11, 0  ;;  %vm232_vm0 = vweird.f32 %v3878_v11 }
  0xe3   :  { %v3521_v13 = vpop.f32.mrf.mxu0 }
  0xe4   :  { %v144_v14 = vshrl.u32 %v143_v12, 23  ;;  %v147_v23 = vand.u32 8388607, %v140_v19  ;;  %vm141_vm9 = vcmp.le.f32.partialorder %v140_v19, 0.7853982 }
  0xe5   :  { %v137_v15 = vpop.f32.mrf.mxu0 }
  0xe6   :  { %v3176_v16 = vadd.s32 4294967169, %v144_v14  ;;  %v148_v41 = vor.u32 8388608, %v147_v23 }
  0xe7   :  { %v3522_v17 = vpop.f32.mrf.mxu0 }
  0xe8   :  { %v150_v18 = vadd.s32 1, %v3176_v16  ;;  %v188_v55 = vshll.u32 %v148_v41, 8 }
  0xea   :  { %vm151_vm1 = vcmp.gt.s32.totalorder %v150_v18, 0 }
  0xeb   :  { %v152_v20 = vsel %vm151_vm1, %v150_v18, 0 }
  0xec   :  { %v154_v21 = vand.u32 31, %v152_v20  ;;  %v153_v24 = vshrl.u32 %v152_v20, 5 }
  0xee   :  { %v155_v22 = vsub.s32 32, %v154_v21  ;;  %v157_v26 = vshll.u32 %v3792_v25, %v154_v21  ;;  %v160_v28 = vshll.u32 %v3793_v27, %v154_v21  ;;  %v163_v32 = vshll.u32 %v3794_v30, %v154_v21 }
  0xef   :  { %v166_v35 = vshll.u32 %v3795_v33, %v154_v21  ;;  %v169_v38 = vshll.u32 %v3796_v36, %v154_v21  ;;  %vm172_vm2 = vcmp.lt.s32.totalorder %v153_v24, 1  ;;  %vm175_vm3 = vcmp.lt.s32.totalorder %v153_v24, 4 }
  0xf0   :  { %v158_v29 = vshrl.u32 %v3793_v27, %v155_v22  ;;  %v161_v31 = vshrl.u32 %v3794_v30, %v155_v22  ;;  %v164_v34 = vshrl.u32 %v3795_v33, %v155_v22  ;;  %v167_v37 = vshrl.u32 %v3796_v36, %v155_v22 }
  0xf1   :  { %v170_v40 = vshrl.u32 %v3797_v39, %v155_v22  ;;  %v156_v50 = vshrl.u32 %v3792_v25, %v155_v22  ;;  %vm174_vm4 = vcmp.lt.s32.totalorder %v153_v24, 3  ;;  %vm173_vm5 = vcmp.lt.s32.totalorder %v153_v24, 2  ;;  %v3548_v39 = vld [vmem:[%s4751_s1] ss:$16 sps:$4 sm:$0xff]  }
  0xf2   :  { %v159_v42 = vor.u32 %v158_v29, %v157_v26  ;;  %v162_v43 = vor.u32 %v161_v31, %v160_v28  ;;  %v165_v44 = vor.u32 %v164_v34, %v163_v32  ;;  %v168_v45 = vor.u32 %v167_v37, %v166_v35  ;;  %v3546_v37 = vld [vmem:[%s4751_s1 + $0x4] ss:$16 sps:$4 sm:$0xff]  }
  0xf3   :  { %v171_v46 = vor.u32 %v170_v40, %v169_v38  ;;  %v4759_v38 = vmov 0   ;;  %481 = vmatprep.subr.bf16.mxu1 %v3546_v37 }
  0xf4   :  { %v177_v47 = vsel %vm175_vm3, %v165_v44, 2102212464  ;;  %v180_v48 = vsel %vm172_vm2, %v159_v42, %v162_v43  ;;  %v184_v49 = vsel %vm172_vm2, %v162_v43, %v165_v44  ;;  %v181_v51 = vsel %vm175_vm3, %v168_v45, 920167782  ;;  %499 = vmatprep.mubr.bf16.mxu1 %v4759_v38  ;;  %879 = vmatprep.mubr.bf16.mxu0 %v4759_v38 }
  0xf5   :  { %v185_v52 = vsel %vm175_vm3, %v171_v46, 1326507024  ;;  %v182_v53 = vsel %vm174_vm4, %v165_v44, %v181_v51  ;;  %v176_v56 = vsel %vm172_vm2, %v156_v50, %v159_v42  ;;  %v178_v57 = vsel %vm174_vm4, %v162_v43, %v177_v47  ;;  %v3909_v42 = vld [vmem:[%s4752_s0] sm:$0xff]   ;;  %482 = vmatpush1.bf16.msra.mxu1 %v3548_v39 }
  0xf6   :  { %v186_v54 = vsel %vm174_vm4, %v168_v45, %v185_v52  ;;  %v183_v58 = vsel %vm173_vm5, %v180_v48, %v182_v53  ;;  %v179_v0 = vsel %vm173_vm5, %v176_v56, %v178_v57  ;;  %v3552_v48 = vld [vmem:[%s4751_s1 + $0x8] ss:$16 sps:$4 sm:$0xff]   ;;  %v3930_v52 = vld [vmem:[%s4753_s2 + $0xe0] ss:$16 sps:$4 sm:$0xff]   ;;  %v3950_v57 = vld [vmem:[%s4753_s2 + $0xc4] ss:$16 sps:$4 sm:$0xff]  }
  0xf7   :  { %v187_v59 = vsel %vm173_vm5, %v184_v49, %v186_v54  ;;  %v3887_v62 = vmul.u32.u64.low %v188_v55, %v183_v58  ;;  %v3888_v63 = vmul.u32.u64.high %v188_v55, %v183_v58, %v3887_v62  ;;  %v195_v2 = vmul.u32 %v188_v55, %v179_v0  ;;  %v3554_v49 = vld [vmem:[%s4751_s1 + $0xc] ss:$16 sps:$4 sm:$0xff]   ;;  %s3799_s1 = smov 112   ;;  %v3936_v54 = vld [vmem:[%s4753_s2 + $0xe4] ss:$16 sps:$4 sm:$0xff]  }
  0xf8   :  { %v3884_v60 = vmul.u32.u64.low %v188_v55, %v187_v59  ;;  %v3885_v61 = vmul.u32.u64.high %v188_v55, %v187_v59, %v3884_v60  ;;  %3193 = vmatmul.mubr.msk.bf16.vlgmr.msra.gmra.mxu1 %vm361_vm12, %v3909_v42  ;;  %554 = vmatprep.subr.bf16.mxu1 %v3554_v49  ;;  %v3941_v55 = vld [vmem:[%s4753_s2 + $0xec] ss:$16 sps:$4 sm:$0xff]   ;;  %v3961_v59 = vld [vmem:[%s4753_s2 + $0xc0] ss:$16 sps:$4 sm:$0xff]   ;;  %vm375_vm2 = vcmask 261120  }
  0xf9   :  { %v198_v1 = vadd.s32 1, %v3888_v63  ;;  %509 = vmatprep.mubr.bf16.mxu1 %v4759_v38  ;;  %555 = vmatpush1.bf16.msra.mxu1 %v3552_v48  ;;  %v3550_v56 = vld [vmem:[%s4752_s0 + $0x8] sm:$0xff]   ;;  %v3968_v60 = vld [vmem:[%s4753_s2 + $0xa4] ss:$16 sps:$4 sm:$0xff]   ;;  %v3991_v0 = vld [vmem:[%s4753_s2 + $0x80] ss:$16 sps:$4 sm:$0xff]  }
  0xfa   :  { %vm197_vm6 = vc.u32 %v3885_v61, %v3887_v62  ;;  %v196_v15 = vadd.s32 %v3887_v62, %v3885_v61  ;;  %847 = vmatprep.subr.bf16.mxu0 %v3936_v54  ;;  %888 = vmatprep.subr.bf16.mxu1 %v3941_v55  ;;  %v3976_v61 = vld [vmem:[%s4753_s2 + $0xa0] ss:$16 sps:$4 sm:$0xff]   ;;  %v3982_v62 = vld [vmem:[%s4753_s2 + $0x84] ss:$16 sps:$4 sm:$0xff]   ;;  %vm3488_vm3 = vmpackc.low %vm375_vm2, %vm375_vm2 }
  0xfb   :  { %v199_v3 = vsel %vm197_vm6, %v198_v1, %v3888_v63  ;;  %848 = vmatpush1.bf16.msra.mxu0 %v3930_v52  ;;  %v3551_v63 = vld [vmem:[%s4752_s0 + $0x10] sm:$0xff]  }
  0xfc   :  { %v200_v4 = vadd.s32 %v199_v3, %v195_v2  ;;  %849 = vmatprep.subr.bf16.mxu0 %v3950_v57  ;;  %v3997_v1 = vld [vmem:[%s4753_s2 + $0x64] ss:$16 sps:$4 sm:$0xff]   ;;  %v4003_v2 = vld [vmem:[%s4753_s2 + $0x60] ss:$16 sps:$4 sm:$0xff]  }
  0xfd   :  { %v4008_v3 = vld [vmem:[%s4753_s2 + $0x44] ss:$16 sps:$4 sm:$0xff]  }
  0xfe   :  { %v201_v5 = vadd.s32 536870912, %v200_v4 }
  0xff   :  { %850 = vmatpush1.bf16.msra.mxu0 %v3961_v59 }
 0x100   :  { %v202_v6 = vshrl.u32 %v201_v5, 30  ;;  %3194 = vmatmul.mubr.msk.bf16.gmra.mxu1 %vm361_vm12, %v3550_v56  ;;  %851 = vmatprep.subr.bf16.mxu0 %v3968_v60  ;;  %v4019_v5 = vld [vmem:[%s4753_s2 + $0x40] ss:$16 sps:$4 sm:$0xff]  }
 0x101   :  { %519 = vmatprep.mubr.bf16.mxu1 %v4759_v38 }
 0x102   :  { %v203_v7 = vshll.u32 %v202_v6, 30  ;;  %v226_v28 = vsub.s32 4, %v202_v6 }
 0x103   :  { %852 = vmatpush1.bf16.msra.mxu0 %v3976_v61 }
 0x104   :  { %v204_v8 = vsub.s32 %v200_v4, %v203_v7  ;;  %v227_v31 = vsel %vm142_vm8, %v226_v28, %v202_v6  ;;  %853 = vmatprep.subr.bf16.mxu0 %v3982_v62  ;;  %v3555_v4 = vld [vmem:[%s4752_s0 + $0x18] sm:$0xff]  }
 0x105   :  { %v229_v33 = vsel %vm141_vm9, 0, %v227_v31  ;;  %v4029_v6 = vld [vmem:[%s4753_s2 + $0xe8] ss:$16 sps:$4 sm:$0xff]   ;;  %v4034_v7 = vld [vmem:[%s4753_s2 + $0xcc] ss:$16 sps:$4 sm:$0xff]  }
 0x106   :  { %v206_v9 = vsub.s32 0, %v204_v8  ;;  %v341_v34 = vadd.s32 3, %v229_v33  ;;  %v233_v36 = vand.u32 3, %v229_v33  ;;  %v3184_v31 = vmul.f32 -1.442695, %v3878_v11 }
 0x107   :  { %854 = vmatpush1.bf16.msra.mxu0 %v3991_v0  ;;  %v392_v33 = vld [vmem:[%s4754_s3] sm:$0xf] }
 0x108   :  { %v3177_v10 = vmin.u32 %v206_v9, %v204_v8  ;;  %v342_v35 = vand.u32 3, %v341_v34  ;;  %vm235_vm11 = vcmp.eq.s32.totalorder %v233_v36, 0  ;;  %vm238_vm15 = vcmp.eq.s32.totalorder %v233_v36, 2  ;;  %3195 = vmatmul.mubr.msk.bf16.gmra.mxu1 %vm361_vm12, %v3551_v63  ;;  %855 = vmatprep.subr.bf16.mxu0 %v3997_v1  ;;  %v4049_v9 = vld [vmem:[%s4753_s2 + $0xac] ss:$16 sps:$4 sm:$0xff]  }
 0x109   :  { %vm234_vm1 = vcmp.lt.s32.totalorder %v233_v36, 2  ;;  %529 = vmatprep.mubr.bf16.mxu1 %v4759_v38 }
 0x10a   :  { %v208_v12 = vclz %v3177_v10  ;;  %vm347_vm10 = vcmp.eq.s32.totalorder %v342_v35, 2  ;;  %vm343_vm13 = vcmp.lt.s32.totalorder %v342_v35, 2  ;;  %vm344_vm14 = vcmp.eq.s32.totalorder %v342_v35, 0  ;;  %v4055_v10 = vld [vmem:[%s4753_s2 + $0xa8] ss:$16 sps:$4 sm:$0xff]  }
 0x10b   :  { %856 = vmatpush1.bf16.msra.mxu0 %v4003_v2 }
 0x10c   :  { %v3178_v13 = vadd.s32 4294967294, %v208_v12  ;;  %857 = vmatprep.subr.bf16.mxu0 %v4008_v3  ;;  %v4061_v12 = vld [vmem:[%s4753_s2 + $0x8c] ss:$16 sps:$4 sm:$0xff]  }
 0x10e   :  { %vm3179_vm7 = vcmp.lt.s32.totalorder %v3178_v13, 0 }
 0x10f   :  { %v211_v14 = vsel %vm3179_vm7, 0, %v3178_v13  ;;  %858 = vmatpush1.bf16.msra.mxu0 %v4019_v5  ;;  %v4068_v13 = vld [vmem:[%s4753_s2 + $0x88] ss:$16 sps:$4 sm:$0xff]  }
 0x110   :  { %v212_v16 = vsub.s32 32, %v211_v14  ;;  %v216_v17 = vsub.s32 4294967266, %v211_v14  ;;  %v213_v18 = vshll.u32 %v204_v8, %v211_v14  ;;  %3196 = vmatmul.mubr.msk.bf16.gmra.mxu1 %vm361_vm12, %v3555_v4  ;;  %v4042_v8 = vld [vmem:[%s4753_s2 + $0xc8] ss:$16 sps:$4 sm:$0xff]   ;;  %v4075_v14 = vld [vmem:[%s4753_s2 + $0x6c] ss:$16 sps:$4 sm:$0xff]  }
 0x111   :  { %572 = vmatprep.mubr.bf16.mxu1 %v4759_v38 }
 0x112   :  { %v214_v20 = vshrl.u32 %v196_v15, %v212_v16  ;;  %v217_v21 = vadd.s32 127, %v216_v17  ;;  %v4081_v15 = vld [vmem:[%s4753_s2 + $0x68] ss:$16 sps:$4 sm:$0xff]   ;;  %v4087_v16 = vld [vmem:[%s4753_s2 + $0x4c] ss:$16 sps:$4 sm:$0xff]  }
 0x113   :  { %v4094_v17 = vld [vmem:[%s4753_s2 + $0x48] ss:$16 sps:$4 sm:$0xff]  }
 0x114   :  { %v215_v22 = vor.u32 %v214_v20, %v213_v18  ;;  %v218_v23 = vshll.u32 %v217_v21, 23  ;;  %v4104_v18 = vld [vmem:[%s4753_s2 + $0x24] ss:$16 sps:$4 sm:$0xff]   ;;  %v4109_v20 = vld [vmem:[%s4753_s2 + $0x2c] ss:$16 sps:$4 sm:$0xff]  }
 0x115   :  { %v4114_v21 = vld [vmem:[%s4753_s2 + $0x20] ss:$16 sps:$4 sm:$0xff]   ;;  %859 = vmatprep.subr.bf16.mxu0 %v4104_v18 }
 0x116   :  { %v219_v24 = vor.u32 4788187, %v218_v23  ;;  %v222_v26 = vcvt.s32.f32 %v215_v22  ;;  %v4119_v22 = vld [vmem:[%s4753_s2 + $0x28] ss:$16 sps:$4 sm:$0xff]   ;;  %860 = vmatpush1.bf16.msra.mxu0 %v4114_v21  ;;  %v4128_v23 = vld [vmem:[%s4753_s2 + $0x4] ss:$16 sps:$4 sm:$0xff]  }
 0x117   :  { %861 = vmatprep.subr.bf16.mxu0 %v4128_v23 }
 0x118   :  { %v220_v25 = vand.u32 2147483647, %v219_v24  ;;  %3197 = vmatmul.mubr.msk.bf16.vlgmr.msra.gmra.mxu1 %vm361_vm12, %v3909_v42  ;;  %v4133_v24 = vld [vmem:[%s4753_s2 + $0xc] ss:$16 sps:$4 sm:$0xff]  }
 0x119   :  { %889 = vmatpush1.bf16.msra.mxu1 %v4029_v6  ;;  %582 = vmatprep.mubr.bf16.mxu1 %v4759_v38 }
 0x11a   :  { %v223_v27 = vmul.f32 %v222_v26, %v220_v25  ;;  %890 = vmatprep.subr.bf16.mxu1 %v4034_v7  ;;  %v4138_v25 = vld [vmem:[%s4753_s2] ss:$16 sps:$4 sm:$0xff]   ;;  %v4143_v26 = vld [vmem:[%s4753_s2 + $0x8] ss:$16 sps:$4 sm:$0xff]  }
 0x11b   :  { %862 = vmatpush1.bf16.msra.mxu0 %v4138_v25 }
 0x11c   :  { %v224_v29 = vxor.u32 2147483648, %v223_v27  ;;  %1158 = vmatprep.subr.bf16.mxu0 %v3936_v54 }
 0x11d   :  { %891 = vmatpush1.bf16.msra.mxu1 %v4042_v8 }
 0x11e   :  { %v225_v30 = vsel %vm142_vm8, %v224_v29, %v223_v27  ;;  %892 = vmatprep.subr.bf16.mxu1 %v4049_v9  ;;  %v394_v29 = vlaneseq }
 0x11f   :  { %v228_v32 = vsel %vm141_vm9, %v3878_v11, %v225_v30 }
 0x120   :  { %3652 = vcosq.f32 %v228_v32  ;;  %3198 = vmatmul.mubr.msk.bf16.gmra.mxu1 %vm361_vm12, %v3550_v56  ;;  %v395_v30 = vshrl.u32 %v394_v29, 7 }
 0x121   :  { %3654 = vsinq.f32 %v228_v32  ;;  %893 = vmatpush1.bf16.msra.mxu1 %v4055_v10  ;;  %592 = vmatprep.mubr.bf16.mxu1 %v4759_v38 }
 0x122   :  { %894 = vmatprep.subr.bf16.mxu1 %v4061_v12  ;;  %v396_v32 = vsub.s32 0, %v395_v30  ;;  %v400_v34 = vsub.s32 1, %v395_v30  ;;  %3656 = vpow2.f32 %v3184_v31 }
 0x124   :  { %v4158_v36 = vrot.slane %v392_v33, %v396_v32 }
 0x125   :  { %895 = vmatpush1.bf16.msra.mxu1 %v4068_v13 }
 0x126   :  { %896 = vmatprep.subr.bf16.mxu1 %v4075_v14 }
 0x128   :  { %3199 = vmatmul.mubr.msk.bf16.gmra.mxu1 %vm361_vm12, %v3551_v63 }
 0x129   :  { %897 = vmatpush1.bf16.msra.mxu1 %v4081_v15  ;;  %602 = vmatprep.mubr.bf16.mxu1 %v4759_v38 }
 0x12a   :  { %898 = vmatprep.subr.bf16.mxu1 %v4087_v16 }
 0x12d   :  { %v3653_v19 = vpop.eup %3652  ;;  %899 = vmatpush1.bf16.msra.mxu1 %v4094_v17 }
 0x12e   :  { %v3655_v40 = vpop.eup %3654  ;;  %v239_v41 = vxor.u32 2147483648, %v3653_v19  ;;  %900 = vmatprep.subr.bf16.mxu1 %v4109_v20 }
 0x12f   :  { %v236_v43 = vxor.u32 2147483648, %v3655_v40  ;;  %v3657_v49 = vpop.eup %3656 }
 0x130   :  { %v349_v44 = vsel %vm347_vm10, %v239_v41, %v3655_v40  ;;  %v240_v47 = vsel %vm238_vm15, %v239_v41, %v3655_v40  ;;  %3200 = vmatmul.mubr.msk.bf16.gmra.mxu1 %vm361_vm12, %v3555_v4  ;;  %v366_v56 = vadd.f32 1.0, %v3657_v49  ;;  %v404_v49 = vsub.s32 2, %v395_v30 }
 0x131   :  { %v346_v45 = vsel %vm344_vm14, %v3653_v19, %v236_v43  ;;  %v237_v46 = vsel %vm235_vm11, %v3653_v19, %v236_v43  ;;  %920 = vmatprep.mubr.bf16.mxu1 %v4759_v38  ;;  %901 = vmatpush1.bf16.msra.mxu1 %v4119_v22  ;;  %v4162_v19 = vrot.slane %v392_v33, %v400_v34 }
 0x132   :  { %v350_v50 = vsel %vm343_vm13, %v346_v45, %v349_v44  ;;  %v241_v53 = vsel %vm234_vm1, %v237_v46, %v240_v47  ;;  %902 = vmatprep.subr.bf16.mxu1 %v4133_v24  ;;  %3658 = vrcp.f32 %v366_v56  ;;  %v408_v56 = vsub.s32 3, %v395_v30 }
 0x133   :  { %v3924_v51 = vsel %vm232_vm0, nan, %v350_v50  ;;  %v3954_v58 = vsel %vm232_vm0, nan, %v241_v53  ;;  %3660 = vtanh.f32 %v3878_v11 }
 0x134   :  { %353 = vrot.lane.b32.xlu0 %v3924_v51, %s3799_s1  ;;  %v4213_v38 = vrot.slane %v392_v33, %v408_v56 }
 0x135   :  { %903 = vmatpush1.bf16.msra.mxu1 %v4143_v26 }
 0x136   :  { %1199 = vmatprep.subr.bf16.mxu1 %v3941_v55 }
 0x138   :  { %244 = vrot.lane.b32.xlu0 %v3954_v58, %s3799_s1 }
 0x1a6   :  { %v354_v27 = vpop.permute.xlu0 %353 }
 0x1a7   :  { %v356_v28 = vadd.f32 %v354_v27, %v3924_v51 }
 0x1a9   :  { %358 = vrot.lane.b32.xlu1 %v356_v28, %s3800_s11 }
 0x1b8   :  { %v4156_v35 = vpop.f32.mrf.mxu1 }
 0x1ba   :  { %v4160_v37 = vpop.f32.mrf.mxu1 }
 0x1bc   :  { %v505_v39 = vpop.f32.mrf.mxu1 }
 0x1bd   :  { %v4165_v40 = vadd.f32 %v505_v39, %v4158_v36 }
 0x1be   :  { %v507_v41 = vpop.f32.mrf.mxu1 }
 0x1bf   :  { %v4168_v42 = vadd.f32 %v507_v41, %v4162_v19 }
 0x1c0   :  { %v511_v43 = vpop.f32.mrf.mxu1 }
 0x1c1   :  { %v4171_v44 = vadd.f32 %v511_v43, %v4158_v36 }
 0x1c2   :  { %v513_v45 = vpop.f32.mrf.mxu1 }
 0x1c3   :  { %v4174_v46 = vadd.f32 %v513_v45, %v4162_v19 }
 0x1c4   :  { %v515_v47 = vpop.f32.mrf.mxu1 }
 0x1c5   :  { %v4177_v48 = vadd.f32 %v515_v47, %v4158_v36 }
 0x1c6   :  { %v517_v50 = vpop.f32.mrf.mxu1 }
 0x1c7   :  { %4761 = vst [vmem:[#allocation5_spill] sm:$0xff] %v4177_v48  ;;  %v4180_v51 = vadd.f32 %v517_v50, %v4162_v19 }
 0x1c8   :  { %v521_v53 = vpop.f32.mrf.mxu1 }
 0x1c9   :  { %4762 = vst [vmem:[#allocation6_spill] sm:$0xff] %v4180_v51  ;;  %v4183_v63 = vadd.f32 %v521_v53, %v4158_v36 }
 0x1ca   :  { %v523_v4 = vpop.f32.mrf.mxu1 }
 0x1cb   :  { %4763 = vst [vmem:[#allocation7_spill] sm:$0xff] %v4183_v63  ;;  %v4186_v27 = vadd.f32 %v523_v4, %v4162_v19 }
 0x1cc   :  { %v525_v28 = vpop.f32.mrf.mxu1 }
 0x1cd   :  { %4764 = vst [vmem:[#allocation8_spill] sm:$0xff] %v4186_v27  ;;  %v4189_v29 = vadd.f32 %v525_v28, %v4158_v36  ;;  %v4209_v28 = vrot.slane %v392_v33, %v404_v49 }
 0x1ce   :  { %v527_v31 = vpop.f32.mrf.mxu1 }
 0x1cf   :  { %4765 = vst [vmem:[#allocation9_spill] sm:$0xff] %v4189_v29  ;;  %v4193_v32 = vadd.f32 %v527_v31, %v4162_v19  ;;  %v3659_v31 = vpop.eup %3658 }
 0x1d0   :  { %v531_v34 = vpop.f32.mrf.mxu1 }
 0x1d1   :  { %4766 = vst [vmem:[#allocation10_spill] sm:$0xff] %v4193_v32  ;;  %v4196_v39 = vadd.f32 %v531_v34, %v4158_v36 }
 0x1d2   :  { %v533_v41 = vpop.f32.mrf.mxu1 }
 0x1d3   :  { %4767 = vst [vmem:[#allocation11_spill] sm:$0xff] %v4196_v39  ;;  %v4199_v43 = vadd.f32 %v533_v41, %v4162_v19  ;;  %v3661_v41 = vpop.eup %3660  ;;  %v245_v39 = vpop.permute.xlu0 %244 }
 0x1d4   :  { %v535_v45 = vpop.f32.mrf.mxu1  ;;  %v247_v49 = vadd.f32 %v245_v39, %v3954_v58 }
 0x1d5   :  { %4768 = vst [vmem:[#allocation12_spill] sm:$0xff] %v4199_v43  ;;  %v4202_v47 = vadd.f32 %v535_v45, %v4158_v36  ;;  %v370_v45 = vadd.f32 %v3661_v41, %v3659_v31 }
 0x1d6   :  { %v537_v50 = vpop.f32.mrf.mxu1 }
 0x1d7   :  { %4769 = vst [vmem:[#allocation13_spill] sm:$0xff] %v4202_v47  ;;  %v4205_v53 = vadd.f32 %v537_v50, %v4162_v19  ;;  %v371_v50 = vmax.f32 %v3878_v11, 0.0 }
 0x1d8   :  { %v4207_v4 = vpop.f32.mrf.mxu1 }
 0x1d9   :  { %4770 = vst [vmem:[#allocation14_spill] sm:$0xff] %v4205_v53  ;;  %v372_v29 = vadd.f32 %v371_v50, %v370_v45 }
 0x1da   :  { %v4211_v34 = vpop.f32.mrf.mxu1 }
 0x1dc   :  { %v578_v43 = vpop.f32.mrf.mxu1 }
 0x1dd   :  { %v4216_v47 = vadd.f32 %v578_v43, %v4209_v28 }
 0x1de   :  { %v580_v32 = vpop.f32.mrf.mxu1 }
 0x1df   :  { %v4220_v30 = vadd.f32 %v580_v32, %v4213_v38 }
 0x1e0   :  { %v584_v53 = vpop.f32.mrf.mxu1 }
 0x1e1   :  { %v4224_v33 = vadd.f32 %v584_v53, %v4209_v28 }
 0x1e2   :  { %v586_v31 = vpop.f32.mrf.mxu1 }
 0x1e3   :  { %v4228_v43 = vadd.f32 %v586_v31, %v4213_v38 }
 0x1e4   :  { %v588_v11 = vpop.f32.mrf.mxu1 }
 0x1e5   :  { %v4231_v32 = vadd.f32 %v588_v11, %v4209_v28 }
 0x1e6   :  { %v590_v58 = vpop.f32.mrf.mxu1 }
 0x1e7   :  { %4771 = vst [vmem:[#allocation15_spill] sm:$0xff] %v4231_v32  ;;  %v4234_v45 = vadd.f32 %v590_v58, %v4213_v38 }
 0x1e8   :  { %v594_v53 = vpop.f32.mrf.mxu1 }
 0x1e9   :  { %4772 = vst [vmem:[#allocation16_spill] sm:$0xff] %v4234_v45 }
 0x21b   :  { %v359_v27 = vpop.permute.xlu1 %358 }
 0x21c   :  { %v362_v56 = vsel %vm361_vm12, %v247_v49, %v359_v27  ;;  %v4237_v27 = vadd.f32 %v594_v53, %v4209_v28  ;;  %v4775_v49 = vmov 0  }
 0x21d   :  { %v373_v41 = vadd.f32 %v372_v29, %v362_v56  ;;  %v596_v29 = vpop.f32.mrf.mxu1 }
 0x21e   :  { %4773 = vst [vmem:[#allocation17_spill] sm:$0xff] %v4237_v27  ;;  %v4242_v50 = vadd.f32 %v596_v29, %v4213_v38 }
 0x21f   :  { %v374_v63 = vmul.f32 0.088388346, %v373_v41 }
 0x220   :  { %4774 = vst [vmem:[#allocation18_spill] sm:$0xff] %v4242_v50 }
 0x221   :  { %v3489_v39 = vpack.c.bf16 %v374_v63, %v374_v63  ;;  %v598_v63 = vpop.f32.mrf.mxu1 }
 0x222   :  { %v4249_v56 = vadd.f32 %v598_v63, %v4209_v28 }
 0x223   :  { %3490 = vmatmul.mubr.msk.bf16.vlgmr.msra.gmra.mxu0 %vm3488_vm3, %v3489_v39  ;;  %3493 = vmatmul.mubr.msk.bf16.vlgmr.msra.gmra.mxu1 %vm3488_vm3, %v3489_v39  ;;  %v600_v31 = vpop.f32.mrf.mxu1 }
 0x224   :  { %1159 = vmatpush1.bf16.msra.mxu0 %v3930_v52  ;;  %1200 = vmatpush1.bf16.msra.mxu1 %v4029_v6  ;;  %4776 = vst [vmem:[#allocation19_spill] sm:$0xff] %v4249_v56  ;;  %v4254_v41 = vadd.f32 %v600_v31, %v4213_v38 }
 0x225   :  { %1160 = vmatprep.subr.bf16.mxu0 %v3950_v57  ;;  %1201 = vmatprep.subr.bf16.mxu1 %v4034_v7  ;;  %v604_v11 = vpop.f32.mrf.mxu1 }
 0x226   :  { %1190 = vmatprep.mubr.bf16.mxu0 %v4775_v49  ;;  %1231 = vmatprep.mubr.bf16.mxu1 %v4775_v49  ;;  %4777 = vst [vmem:[#allocation20_spill] sm:$0xff] %v4254_v41  ;;  %v4259_v58 = vadd.f32 %v604_v11, %v4209_v28  ;;  %v502_v11 = vadd.f32 %v4156_v35, %v4158_v36 }
 0x227   :  { %v606_v39 = vpop.f32.mrf.mxu1  ;;  %v577_v35 = vadd.f32 %v4211_v34, %v4213_v38  ;;  %v378_v34 = vld [vmem:[%s4755_s6] sm:$0xff] }
 0x228   :  { %1161 = vmatpush1.bf16.msra.mxu0 %v3961_v59  ;;  %1202 = vmatpush1.bf16.msra.mxu1 %v4042_v8  ;;  %4778 = vst [vmem:[#allocation21_spill] sm:$0xff] %v4259_v58  ;;  %v4264_v53 = vadd.f32 %v606_v39, %v4213_v38 }
 0x229   :  { %1162 = vmatprep.subr.bf16.mxu0 %v3968_v60  ;;  %1203 = vmatprep.subr.bf16.mxu1 %v4049_v9  ;;  %v608_v29 = vpop.f32.mrf.mxu1 }
 0x22a   :  { %4779 = vst [vmem:[#allocation22_spill] sm:$0xff] %v4264_v53  ;;  %v4269_v63 = vadd.f32 %v608_v29, %v4209_v28 }
 0x22b   :  { %v4291_v31 = vpop.f32.mrf.mxu1 }
 0x22c   :  { %1163 = vmatpush1.bf16.msra.mxu0 %v3976_v61  ;;  %1204 = vmatpush1.bf16.msra.mxu1 %v4055_v10  ;;  %4780 = vst [vmem:[#allocation23_spill] sm:$0xff] %v4269_v63  ;;  %4781 = vst [vmem:[#allocation24_spill] sm:$0xff] %v4291_v31  ;;  %v504_v63 = vadd.f32 %v4160_v37, %v4162_v19  ;;  %v575_v31 = vadd.f32 %v4207_v4, %v4209_v28 }
 0x22d   :  { %1164 = vmatprep.subr.bf16.mxu0 %v3982_v62  ;;  %1205 = vmatprep.subr.bf16.mxu1 %v4061_v12 }
 0x230   :  { %1165 = vmatpush1.bf16.msra.mxu0 %v3991_v0  ;;  %1206 = vmatpush1.bf16.msra.mxu1 %v4068_v13 }
 0x231   :  { %1166 = vmatprep.subr.bf16.mxu0 %v3997_v1  ;;  %1207 = vmatprep.subr.bf16.mxu1 %v4075_v14 }
 0x234   :  { %1167 = vmatpush1.bf16.msra.mxu0 %v4003_v2  ;;  %1208 = vmatpush1.bf16.msra.mxu1 %v4081_v15 }
 0x235   :  { %1168 = vmatprep.subr.bf16.mxu0 %v4008_v3  ;;  %1209 = vmatprep.subr.bf16.mxu1 %v4087_v16 }
 0x238   :  { %1169 = vmatpush1.bf16.msra.mxu0 %v4019_v5  ;;  %1210 = vmatpush1.bf16.msra.mxu1 %v4094_v17 }
 0x239   :  { %1170 = vmatprep.subr.bf16.mxu0 %v4104_v18  ;;  %1211 = vmatprep.subr.bf16.mxu1 %v4109_v20 }
 0x23c   :  { %1171 = vmatpush1.bf16.msra.mxu0 %v4114_v21  ;;  %1212 = vmatpush1.bf16.msra.mxu1 %v4119_v22 }
 0x23d   :  { %1172 = vmatprep.subr.bf16.mxu0 %v4128_v23  ;;  %1213 = vmatprep.subr.bf16.mxu1 %v4133_v24 }
 0x240   :  { %1173 = vmatpush1.bf16.msra.mxu0 %v4138_v25  ;;  %1214 = vmatpush1.bf16.msra.mxu1 %v4143_v26 }
 0x241   :  { %1470 = vmatprep.subr.bf16.mxu0 %v3936_v54  ;;  %1511 = vmatprep.subr.bf16.mxu1 %v3941_v55 }
 0x2e3   :  { %v881_v39 = vpop.f32.mrf.mxu0  ;;  %v922_v29 = vpop.f32.mrf.mxu1 }
 0x2e4   :  { %v929_v58 = vadd.f32 %v881_v39, %v502_v11  ;;  %v931_v11 = vadd.f32 %v922_v29, %v575_v31 }
 0x2e5   :  { %v883_v53 = vpop.f32.mrf.mxu0  ;;  %v924_v56 = vpop.f32.mrf.mxu1 }
 0x2e6   :  { %v3233_v41 = vmul.f32 -1.442695, %v929_v58  ;;  %v930_v27 = vadd.f32 %v883_v53, %v504_v63  ;;  %v932_v36 = vadd.f32 %v924_v56, %v577_v35 }
 0x2e7   :  { %v885_v50 = vpop.f32.mrf.mxu0  ;;  %v926_v32 = vpop.f32.mrf.mxu1 }
 0x2e8   :  { %3662 = vpow2.f32 %v3233_v41  ;;  %v3234_v45 = vmul.f32 -1.442695, %v930_v27  ;;  %v3235_v37 = vmul.f32 -1.442695, %v932_v36 }
 0x2e9   :  { %v886_v51 = vpop.f32.mrf.mxu0  ;;  %v927_v48 = vpop.f32.mrf.mxu1 }
 0x2ea   :  { %3664 = vpow2.f32 %v3234_v45 }
 0x2eb   :  { %3666 = vpow2.f32 %v3235_v37 }
 0x2f5   :  { %v3663_v19 = vpop.eup %3662 }
 0x2f6   :  { %v936_v39 = vadd.f32 1.0, %v3663_v19 }
 0x2f7   :  { %v3665_v58 = vpop.eup %3664 }
 0x2f8   :  { %3668 = vrcp.f32 %v936_v39  ;;  %v942_v32 = vadd.f32 1.0, %v3665_v58  ;;  %v3667_v51 = vpop.eup %3666 }
 0x2f9   :  { %3670 = vtanh.f32 %v931_v11  ;;  %v949_v50 = vadd.f32 1.0, %v3667_v51 }
 0x2fa   :  { %3672 = vrcp.f32 %v942_v32 }
 0x2fb   :  { %3674 = vrcp.f32 %v949_v50 }
 0x305   :  { %v3669_v48 = vpop.eup %3668 }
 0x306   :  { %v3671_v45 = vpop.eup %3670 }
 0x307   :  { %v3673_v27 = vpop.eup %3672  ;;  %v953_v4 = vmul.f32 %v3671_v45, %v3669_v48 }
 0x308   :  { %v952_v28 = vmul.f32 %v3673_v27, %v378_v34  ;;  %v3675_v41 = vpop.eup %3674 }
 0x30a   :  { %v4304_v56 = vadd.f32 %v953_v4, %v952_v28 }
 0x30c   :  { %3676 = vtanh.f32 %v4304_v56 }
 0x319   :  { %v3677_v53 = vpop.eup %3676 }
 0x31a   :  { %v956_v63 = vmul.f32 %v3677_v53, %v3675_v41 }
 0x31c   :  { %957 = vst [vmem:[%s4756_s7] sm:$0xff] %v956_v63  ;;  %v965_v31 = vpack.c.bf16 %v956_v63, %v956_v63 }
 0x31e   :  { %1191 = vmatmul.mubr.bf16.vlgmr.msra.gmra.mxu0 %v965_v31  ;;  %1232 = vmatmul.mubr.bf16.vlgmr.msra.gmra.mxu1 %v965_v31 }
 0x31f   :  { %1471 = vmatpush1.bf16.msra.mxu0 %v3930_v52  ;;  %1512 = vmatpush1.bf16.msra.mxu1 %v4029_v6 }
 0x320   :  { %1472 = vmatprep.subr.bf16.mxu0 %v3950_v57  ;;  %1513 = vmatprep.subr.bf16.mxu1 %v4034_v7 }
 0x321   :  { %1502 = vmatprep.mubr.bf16.mxu0 %v4775_v49  ;;  %1543 = vmatprep.mubr.bf16.mxu1 %v4775_v49 }
 0x323   :  { %1473 = vmatpush1.bf16.msra.mxu0 %v3961_v59  ;;  %1514 = vmatpush1.bf16.msra.mxu1 %v4042_v8 }
 0x324   :  { %1474 = vmatprep.subr.bf16.mxu0 %v3968_v60  ;;  %1515 = vmatprep.subr.bf16.mxu1 %v4049_v9 }
 0x327   :  { %1475 = vmatpush1.bf16.msra.mxu0 %v3976_v61  ;;  %1516 = vmatpush1.bf16.msra.mxu1 %v4055_v10 }
 0x328   :  { %1476 = vmatprep.subr.bf16.mxu0 %v3982_v62  ;;  %1517 = vmatprep.subr.bf16.mxu1 %v4061_v12 }
 0x32b   :  { %1477 = vmatpush1.bf16.msra.mxu0 %v3991_v0  ;;  %1518 = vmatpush1.bf16.msra.mxu1 %v4068_v13 }
 0x32c   :  { %1478 = vmatprep.subr.bf16.mxu0 %v3997_v1  ;;  %1519 = vmatprep.subr.bf16.mxu1 %v4075_v14 }
 0x32f   :  { %1479 = vmatpush1.bf16.msra.mxu0 %v4003_v2  ;;  %1520 = vmatpush1.bf16.msra.mxu1 %v4081_v15 }
 0x330   :  { %1480 = vmatprep.subr.bf16.mxu0 %v4008_v3  ;;  %1521 = vmatprep.subr.bf16.mxu1 %v4087_v16 }
 0x333   :  { %1481 = vmatpush1.bf16.msra.mxu0 %v4019_v5  ;;  %1522 = vmatpush1.bf16.msra.mxu1 %v4094_v17 }
 0x334   :  { %1482 = vmatprep.subr.bf16.mxu0 %v4104_v18  ;;  %1523 = vmatprep.subr.bf16.mxu1 %v4109_v20 }
 0x337   :  { %1483 = vmatpush1.bf16.msra.mxu0 %v4114_v21  ;;  %1524 = vmatpush1.bf16.msra.mxu1 %v4119_v22 }
 0x338   :  { %1484 = vmatprep.subr.bf16.mxu0 %v4128_v23  ;;  %1525 = vmatprep.subr.bf16.mxu1 %v4133_v24 }
 0x33b   :  { %1485 = vmatpush1.bf16.msra.mxu0 %v4138_v25  ;;  %1526 = vmatpush1.bf16.msra.mxu1 %v4143_v26 }
 0x33c   :  { %1782 = vmatprep.subr.bf16.mxu0 %v3936_v54  ;;  %1823 = vmatprep.subr.bf16.mxu1 %v3941_v55 }
 0x3de   :  { %v1192_v29 = vpop.f32.mrf.mxu0  ;;  %v1233_v35 = vpop.f32.mrf.mxu1 }
 0x3df   :  { %v1240_v36 = vadd.f32 %v1192_v29, %v4165_v40  ;;  %v1242_v55 = vadd.f32 %v1233_v35, %v4216_v47 }
 0x3e0   :  { %v1194_v37 = vpop.f32.mrf.mxu0  ;;  %v1235_v19 = vpop.f32.mrf.mxu1 }
 0x3e1   :  { %v3268_v11 = vmul.f32 -1.442695, %v1240_v36  ;;  %v1241_v39 = vadd.f32 %v1194_v37, %v4168_v42  ;;  %v1243_v54 = vadd.f32 %v1235_v19, %v4220_v30  ;;  %v4427_v19 = vld [vmem:[%s4753_s2 + $0xc4] ss:$16 sps:$4 sm:$0xff]  }
 0x3e2   :  { %v1196_v58 = vpop.f32.mrf.mxu0  ;;  %v1237_v32 = vpop.f32.mrf.mxu1 }
 0x3e3   :  { %3678 = vpow2.f32 %v3268_v11  ;;  %v3269_v51 = vmul.f32 -1.442695, %v1241_v39  ;;  %v3270_v45 = vmul.f32 -1.442695, %v1243_v54  ;;  %v4432_v11 = vld [vmem:[%s4753_s2 + $0xcc] ss:$16 sps:$4 sm:$0xff]  }
 0x3e4   :  { %v1197_v48 = vpop.f32.mrf.mxu0  ;;  %v1238_v34 = vpop.f32.mrf.mxu1  ;;  %v4437_v39 = vld [vmem:[%s4753_s2 + $0xc0] ss:$16 sps:$4 sm:$0xff]   ;;  %v4442_v58 = vld [vmem:[%s4753_s2 + $0xc8] ss:$16 sps:$4 sm:$0xff]   ;;  %v4451_v32 = vld [vmem:[%s4753_s2 + $0xa4] ss:$16 sps:$4 sm:$0xff]  }
 0x3e5   :  { %3680 = vpow2.f32 %v3269_v51  ;;  %v4456_v51 = vld [vmem:[%s4753_s2 + $0xac] ss:$16 sps:$4 sm:$0xff]   ;;  %v4461_v48 = vld [vmem:[%s4753_s2 + $0xa0] ss:$16 sps:$4 sm:$0xff]   ;;  %v4466_v34 = vld [vmem:[%s4753_s2 + $0xa8] ss:$16 sps:$4 sm:$0xff]  }
 0x3e6   :  { %3682 = vtanh.f32 %v1242_v55  ;;  %v4475_v54 = vld [vmem:[%s4753_s2 + $0x84] ss:$16 sps:$4 sm:$0xff]   ;;  %v4480_v55 = vld [vmem:[%s4753_s2 + $0x8c] ss:$16 sps:$4 sm:$0xff]  }
 0x3e7   :  { %3684 = vpow2.f32 %v3270_v45  ;;  %v4485_v45 = vld [vmem:[%s4753_s2 + $0x80] ss:$16 sps:$4 sm:$0xff]  }
 0x3f0   :  { %v3679_v27 = vpop.eup %3678 }
 0x3f1   :  { %v1247_v50 = vadd.f32 1.0, %v3679_v27  ;;  %v4490_v27 = vld [vmem:[%s4753_s2 + $0x88] ss:$16 sps:$4 sm:$0xff]  }
 0x3f2   :  { %v3681_v40 = vpop.eup %3680 }
 0x3f3   :  { %3686 = vrcp.f32 %v1247_v50  ;;  %v1253_v4 = vadd.f32 1.0, %v3681_v40  ;;  %v3683_v42 = vpop.eup %3682  ;;  %v4497_v50 = vld [vmem:[%s4753_s2 + $0x64] ss:$16 sps:$4 sm:$0xff]   ;;  %v4502_v40 = vld [vmem:[%s4753_s2 + $0x6c] ss:$16 sps:$4 sm:$0xff]  }
 0x3f4   :  { %v3685_v28 = vpop.eup %3684 }
 0x3f5   :  { %3688 = vrcp.f32 %v1253_v4  ;;  %v1260_v31 = vadd.f32 1.0, %v3685_v28  ;;  %v4509_v4 = vld [vmem:[%s4753_s2 + $0x60] ss:$16 sps:$4 sm:$0xff]   ;;  %v4521_v28 = vld [vmem:[%s4753_s2 + $0x44] ss:$16 sps:$4 sm:$0xff]  }
 0x3f7   :  { %3690 = vrcp.f32 %v1260_v31  ;;  %v4545_v31 = vld [vmem:[%s4753_s2 + $0x24] ss:$16 sps:$4 sm:$0xff]  }
 0x400   :  { %v3687_v41 = vpop.eup %3686 }
 0x401   :  { %v1264_v53 = vmul.f32 %v3687_v41, %v3683_v42  ;;  %v4514_v42 = vld [vmem:[%s4753_s2 + $0x68] ss:$16 sps:$4 sm:$0xff]   ;;  %v4526_v41 = vld [vmem:[%s4753_s2 + $0x4c] ss:$16 sps:$4 sm:$0xff]  }
 0x402   :  { %v3689_v63 = vpop.eup %3688 }
 0x403   :  { %v1263_v29 = vmul.f32 %v3689_v63, %v4304_v56  ;;  %v4418_v56 = vld [vmem:[%s4753_s2 + $0xe8] ss:$16 sps:$4 sm:$0xff]  }
 0x404   :  { %v3691_v47 = vpop.eup %3690  ;;  %v4538_v63 = vld [vmem:[%s4753_s2 + $0x48] ss:$16 sps:$4 sm:$0xff]  }
 0x405   :  { %v4349_v30 = vadd.f32 %v1264_v53, %v1263_v29  ;;  %v4533_v53 = vld [vmem:[%s4753_s2 + $0x40] ss:$16 sps:$4 sm:$0xff]   ;;  %v4550_v29 = vld [vmem:[%s4753_s2 + $0x2c] ss:$16 sps:$4 sm:$0xff]  }
 0x407   :  { %3692 = vtanh.f32 %v4349_v30 }
 0x414   :  { %v3693_v35 = vpop.eup %3692 }
 0x415   :  { %v1267_v36 = vmul.f32 %v3693_v35, %v3691_v47  ;;  %v4562_v47 = vld [vmem:[%s4753_s2 + $0x28] ss:$16 sps:$4 sm:$0xff]   ;;  %v4569_v35 = vld [vmem:[%s4753_s2 + $0x4] ss:$16 sps:$4 sm:$0xff]  }
 0x417   :  { %3271 = vst [vmem:[%s4756_s7 + $0x8] sm:$0xff] %v1267_v36  ;;  %v1277_v37 = vpack.c.bf16 %v1267_v36, %v1267_v36  ;;  %v4574_v36 = vld [vmem:[%s4753_s2 + $0xc] ss:$16 sps:$4 sm:$0xff]  }
 0x419   :  { %1503 = vmatmul.mubr.bf16.vlgmr.msra.gmra.mxu0 %v1277_v37  ;;  %1544 = vmatmul.mubr.bf16.vlgmr.msra.gmra.mxu1 %v1277_v37  ;;  %v4581_v37 = vld [vmem:[%s4753_s2] ss:$16 sps:$4 sm:$0xff]  }
 0x41a   :  { %1783 = vmatpush1.bf16.msra.mxu0 %v3930_v52  ;;  %1824 = vmatpush1.bf16.msra.mxu1 %v4029_v6 }
 0x41b   :  { %1784 = vmatprep.subr.bf16.mxu0 %v3950_v57  ;;  %1825 = vmatprep.subr.bf16.mxu1 %v4034_v7 }
 0x41c   :  { %1814 = vmatprep.mubr.bf16.mxu0 %v4775_v49  ;;  %1855 = vmatprep.mubr.bf16.mxu1 %v4775_v49 }
 0x41e   :  { %1785 = vmatpush1.bf16.msra.mxu0 %v3961_v59  ;;  %1826 = vmatpush1.bf16.msra.mxu1 %v4042_v8 }
 0x41f   :  { %1786 = vmatprep.subr.bf16.mxu0 %v3968_v60  ;;  %1827 = vmatprep.subr.bf16.mxu1 %v4049_v9 }
 0x422   :  { %1787 = vmatpush1.bf16.msra.mxu0 %v3976_v61  ;;  %1828 = vmatpush1.bf16.msra.mxu1 %v4055_v10 }
 0x423   :  { %1788 = vmatprep.subr.bf16.mxu0 %v3982_v62  ;;  %1829 = vmatprep.subr.bf16.mxu1 %v4061_v12 }
 0x426   :  { %1789 = vmatpush1.bf16.msra.mxu0 %v3991_v0  ;;  %1830 = vmatpush1.bf16.msra.mxu1 %v4068_v13 }
 0x427   :  { %1790 = vmatprep.subr.bf16.mxu0 %v3997_v1  ;;  %1831 = vmatprep.subr.bf16.mxu1 %v4075_v14 }
 0x42a   :  { %1791 = vmatpush1.bf16.msra.mxu0 %v4003_v2  ;;  %1832 = vmatpush1.bf16.msra.mxu1 %v4081_v15 }
 0x42b   :  { %1792 = vmatprep.subr.bf16.mxu0 %v4008_v3  ;;  %1833 = vmatprep.subr.bf16.mxu1 %v4087_v16 }
 0x42e   :  { %1793 = vmatpush1.bf16.msra.mxu0 %v4019_v5  ;;  %1834 = vmatpush1.bf16.msra.mxu1 %v4094_v17 }
 0x42f   :  { %1794 = vmatprep.subr.bf16.mxu0 %v4104_v18  ;;  %1835 = vmatprep.subr.bf16.mxu1 %v4109_v20 }
 0x432   :  { %1795 = vmatpush1.bf16.msra.mxu0 %v4114_v21  ;;  %1836 = vmatpush1.bf16.msra.mxu1 %v4119_v22 }
 0x433   :  { %1796 = vmatprep.subr.bf16.mxu0 %v4128_v23  ;;  %1837 = vmatprep.subr.bf16.mxu1 %v4133_v24 }
 0x436   :  { %1797 = vmatpush1.bf16.msra.mxu0 %v4138_v25  ;;  %1838 = vmatpush1.bf16.msra.mxu1 %v4143_v26 }
 0x4d9   :  { %v1504_v52 = vpop.f32.mrf.mxu0  ;;  %v1545_v57 = vpop.f32.mrf.mxu1 }
 0x4da   :  { %v1552_v59 = vadd.f32 %v1504_v52, %v4171_v44  ;;  %v1554_v8 = vadd.f32 %v1545_v57, %v4224_v33  ;;  %v4408_v33 = vld [vmem:[%s4753_s2 + $0xec] ss:$16 sps:$4 sm:$0xff]   ;;  %v4586_v52 = vld [vmem:[%s4753_s2 + $0x8] ss:$16 sps:$4 sm:$0xff]  }
 0x4db   :  { %v1506_v60 = vpop.f32.mrf.mxu0  ;;  %v1547_v61 = vpop.f32.mrf.mxu1  ;;  %2135 = vmatprep.subr.bf16.mxu1 %v4408_v33 }
 0x4dc   :  { %v3304_v62 = vmul.f32 -1.442695, %v1552_v59  ;;  %v1553_v0 = vadd.f32 %v1506_v60, %v4174_v46  ;;  %v1555_v7 = vadd.f32 %v1547_v61, %v4228_v43  ;;  %v4403_v46 = vld [vmem:[%s4753_s2 + $0xe4] ss:$16 sps:$4 sm:$0xff]   ;;  %v4413_v43 = vld [vmem:[%s4753_s2 + $0xe0] ss:$16 sps:$4 sm:$0xff]  }
 0x4dd   :  { %v1508_v1 = vpop.f32.mrf.mxu0  ;;  %v1549_v2 = vpop.f32.mrf.mxu1  ;;  %2094 = vmatprep.subr.bf16.mxu0 %v4403_v46  ;;  %v4782_v60 = vld [vmem:[#allocation5_spill] sm:$0xff] }
 0x4de   :  { %3694 = vpow2.f32 %v3304_v62  ;;  %v3305_v3 = vmul.f32 -1.442695, %v1553_v0  ;;  %v3306_v9 = vmul.f32 -1.442695, %v1555_v7  ;;  %v4783_v2 = vld [vmem:[#allocation6_spill] sm:$0xff] }
 0x4df   :  { %v1509_v5 = vpop.f32.mrf.mxu0  ;;  %v1550_v6 = vpop.f32.mrf.mxu1 }
 0x4e0   :  { %3696 = vpow2.f32 %v3305_v3 }
 0x4e1   :  { %3698 = vtanh.f32 %v1554_v8 }
 0x4e2   :  { %3700 = vpow2.f32 %v3306_v9 }
 0x4eb   :  { %v3695_v10 = vpop.eup %3694 }
 0x4ec   :  { %v1559_v12 = vadd.f32 1.0, %v3695_v10  ;;  %v4784_v10 = vld [vmem:[#allocation16_spill] sm:$0xff] }
 0x4ed   :  { %v3697_v13 = vpop.eup %3696 }
 0x4ee   :  { %3702 = vrcp.f32 %v1559_v12  ;;  %v1565_v14 = vadd.f32 1.0, %v3697_v13  ;;  %v3699_v15 = vpop.eup %3698  ;;  %v4785_v13 = vld [vmem:[#allocation15_spill] sm:$0xff] }
 0x4ef   :  { %v3701_v16 = vpop.eup %3700 }
 0x4f0   :  { %3704 = vrcp.f32 %v1565_v14  ;;  %v1572_v21 = vadd.f32 1.0, %v3701_v16 }
 0x4f2   :  { %3706 = vrcp.f32 %v1572_v21 }
 0x4fb   :  { %v3703_v17 = vpop.eup %3702 }
 0x4fc   :  { %v1576_v18 = vmul.f32 %v3703_v17, %v3699_v15 }
 0x4fd   :  { %v3705_v20 = vpop.eup %3704 }
 0x4fe   :  { %v1575_v22 = vmul.f32 %v3705_v20, %v4349_v30  ;;  %v4557_v30 = vld [vmem:[%s4753_s2 + $0x20] ss:$16 sps:$4 sm:$0xff]  }
 0x4ff   :  { %v3707_v24 = vpop.eup %3706 }
 0x500   :  { %v4392_v23 = vadd.f32 %v1576_v18, %v1575_v22 }
 0x502   :  { %3708 = vtanh.f32 %v4392_v23 }
 0x50f   :  { %v3709_v25 = vpop.eup %3708 }
 0x510   :  { %v1579_v26 = vmul.f32 %v3709_v25, %v3707_v24 }
 0x512   :  { %3307 = vst [vmem:[%s4756_s7 + $0x10] sm:$0xff] %v1579_v26  ;;  %v1589_v44 = vpack.c.bf16 %v1579_v26, %v1579_v26 }
 0x514   :  { %1815 = vmatmul.mubr.bf16.vlgmr.msra.gmra.mxu0 %v1589_v44  ;;  %1856 = vmatmul.mubr.bf16.vlgmr.msra.gmra.mxu1 %v1589_v44 }
 0x515   :  { %2126 = vmatprep.mubr.bf16.mxu0 %v4775_v49  ;;  %2167 = vmatprep.mubr.bf16.mxu1 %v4775_v49 }
 0x516   :  { %2095 = vmatpush1.bf16.msra.mxu0 %v4413_v43  ;;  %2136 = vmatpush1.bf16.msra.mxu1 %v4418_v56 }
 0x517   :  { %2096 = vmatprep.subr.bf16.mxu0 %v4427_v19  ;;  %2137 = vmatprep.subr.bf16.mxu1 %v4432_v11 }
 0x51a   :  { %2097 = vmatpush1.bf16.msra.mxu0 %v4437_v39  ;;  %2138 = vmatpush1.bf16.msra.mxu1 %v4442_v58 }
 0x51b   :  { %2098 = vmatprep.subr.bf16.mxu0 %v4451_v32  ;;  %2139 = vmatprep.subr.bf16.mxu1 %v4456_v51 }
 0x51e   :  { %2099 = vmatpush1.bf16.msra.mxu0 %v4461_v48  ;;  %2140 = vmatpush1.bf16.msra.mxu1 %v4466_v34 }
 0x51f   :  { %2100 = vmatprep.subr.bf16.mxu0 %v4475_v54  ;;  %2141 = vmatprep.subr.bf16.mxu1 %v4480_v55 }
 0x522   :  { %2101 = vmatpush1.bf16.msra.mxu0 %v4485_v45  ;;  %2142 = vmatpush1.bf16.msra.mxu1 %v4490_v27 }
 0x523   :  { %2102 = vmatprep.subr.bf16.mxu0 %v4497_v50  ;;  %2143 = vmatprep.subr.bf16.mxu1 %v4502_v40 }
 0x526   :  { %2103 = vmatpush1.bf16.msra.mxu0 %v4509_v4  ;;  %2144 = vmatpush1.bf16.msra.mxu1 %v4514_v42 }
 0x527   :  { %2104 = vmatprep.subr.bf16.mxu0 %v4521_v28  ;;  %2145 = vmatprep.subr.bf16.mxu1 %v4526_v41 }
 0x52a   :  { %2105 = vmatpush1.bf16.msra.mxu0 %v4533_v53  ;;  %2146 = vmatpush1.bf16.msra.mxu1 %v4538_v63 }
 0x52b   :  { %2106 = vmatprep.subr.bf16.mxu0 %v4545_v31  ;;  %2147 = vmatprep.subr.bf16.mxu1 %v4550_v29 }
 0x52e   :  { %2107 = vmatpush1.bf16.msra.mxu0 %v4557_v30  ;;  %2148 = vmatpush1.bf16.msra.mxu1 %v4562_v47 }
 0x52f   :  { %2108 = vmatprep.subr.bf16.mxu0 %v4569_v35  ;;  %2149 = vmatprep.subr.bf16.mxu1 %v4574_v36 }
 0x532   :  { %2109 = vmatpush1.bf16.msra.mxu0 %v4581_v37  ;;  %2150 = vmatpush1.bf16.msra.mxu1 %v4586_v52 }
 0x533   :  { %2406 = vmatprep.subr.bf16.mxu0 %v4403_v46  ;;  %2447 = vmatprep.subr.bf16.mxu1 %v4408_v33 }
 0x5d4   :  { %v1816_v57 = vpop.f32.mrf.mxu0  ;;  %v1857_v59 = vpop.f32.mrf.mxu1 }
 0x5d5   :  { %v1864_v61 = vadd.f32 %v1816_v57, %v4782_v60  ;;  %v1866_v14 = vadd.f32 %v1857_v59, %v4785_v13 }
 0x5d6   :  { %v1818_v62 = vpop.f32.mrf.mxu0  ;;  %v1859_v0 = vpop.f32.mrf.mxu1 }
 0x5d7   :  { %v3340_v1 = vmul.f32 -1.442695, %v1864_v61  ;;  %v1865_v3 = vadd.f32 %v1818_v62, %v4783_v2  ;;  %v1867_v12 = vadd.f32 %v1859_v0, %v4784_v10  ;;  %v4786_v2 = vld [vmem:[#allocation7_spill] sm:$0xff] }
 0x5d8   :  { %v1820_v5 = vpop.f32.mrf.mxu0  ;;  %v1861_v6 = vpop.f32.mrf.mxu1 }
 0x5d9   :  { %3710 = vpow2.f32 %v3340_v1  ;;  %v3341_v7 = vmul.f32 -1.442695, %v1865_v3  ;;  %v3342_v15 = vmul.f32 -1.442695, %v1867_v12 }
 0x5da   :  { %v1821_v8 = vpop.f32.mrf.mxu0  ;;  %v1862_v9 = vpop.f32.mrf.mxu1 }
 0x5db   :  { %3712 = vpow2.f32 %v3341_v7  ;;  %v4787_v8 = vld [vmem:[#allocation8_spill] sm:$0xff] }
 0x5dc   :  { %3714 = vtanh.f32 %v1866_v14 }
 0x5dd   :  { %3716 = vpow2.f32 %v3342_v15 }
 0x5e6   :  { %v3711_v16 = vpop.eup %3710 }
 0x5e7   :  { %v1871_v17 = vadd.f32 1.0, %v3711_v16  ;;  %v4788_v16 = vld [vmem:[#allocation18_spill] sm:$0xff] }
 0x5e8   :  { %v3713_v18 = vpop.eup %3712 }
 0x5e9   :  { %3718 = vrcp.f32 %v1871_v17  ;;  %v1877_v20 = vadd.f32 1.0, %v3713_v18  ;;  %v3715_v21 = vpop.eup %3714  ;;  %v4789_v18 = vld [vmem:[#allocation17_spill] sm:$0xff] }
 0x5ea   :  { %v3717_v22 = vpop.eup %3716 }
 0x5eb   :  { %3720 = vrcp.f32 %v1877_v20  ;;  %v1884_v44 = vadd.f32 1.0, %v3717_v22 }
 0x5ed   :  { %3722 = vrcp.f32 %v1884_v44 }
 0x5f6   :  { %v3719_v24 = vpop.eup %3718 }
 0x5f7   :  { %v1888_v25 = vmul.f32 %v3719_v24, %v3715_v21 }
 0x5f8   :  { %v3721_v26 = vpop.eup %3720 }
 0x5f9   :  { %v1887_v57 = vmul.f32 %v3721_v26, %v4392_v23 }
 0x5fa   :  { %v3723_v59 = vpop.eup %3722 }
 0x5fb   :  { %v4599_v60 = vadd.f32 %v1888_v25, %v1887_v57 }
 0x5fd   :  { %3724 = vtanh.f32 %v4599_v60 }
 0x60a   :  { %v3725_v61 = vpop.eup %3724 }
 0x60b   :  { %v1891_v62 = vmul.f32 %v3725_v61, %v3723_v59 }
 0x60d   :  { %3343 = vst [vmem:[%s4756_s7 + $0x18] sm:$0xff] %v1891_v62  ;;  %v1901_v0 = vpack.c.bf16 %v1891_v62, %v1891_v62 }
 0x60f   :  { %2127 = vmatmul.mubr.bf16.vlgmr.msra.gmra.mxu0 %v1901_v0  ;;  %2168 = vmatmul.mubr.bf16.vlgmr.msra.gmra.mxu1 %v1901_v0 }
 0x610   :  { %2407 = vmatpush1.bf16.msra.mxu0 %v4413_v43  ;;  %2448 = vmatpush1.bf16.msra.mxu1 %v4418_v56 }
 0x611   :  { %2408 = vmatprep.subr.bf16.mxu0 %v4427_v19  ;;  %2449 = vmatprep.subr.bf16.mxu1 %v4432_v11 }
 0x612   :  { %2438 = vmatprep.mubr.bf16.mxu0 %v4775_v49  ;;  %2479 = vmatprep.mubr.bf16.mxu1 %v4775_v49 }
 0x614   :  { %2409 = vmatpush1.bf16.msra.mxu0 %v4437_v39  ;;  %2450 = vmatpush1.bf16.msra.mxu1 %v4442_v58 }
 0x615   :  { %2410 = vmatprep.subr.bf16.mxu0 %v4451_v32  ;;  %2451 = vmatprep.subr.bf16.mxu1 %v4456_v51 }
 0x618   :  { %2411 = vmatpush1.bf16.msra.mxu0 %v4461_v48  ;;  %2452 = vmatpush1.bf16.msra.mxu1 %v4466_v34 }
 0x619   :  { %2412 = vmatprep.subr.bf16.mxu0 %v4475_v54  ;;  %2453 = vmatprep.subr.bf16.mxu1 %v4480_v55 }
 0x61c   :  { %2413 = vmatpush1.bf16.msra.mxu0 %v4485_v45  ;;  %2454 = vmatpush1.bf16.msra.mxu1 %v4490_v27 }
 0x61d   :  { %2414 = vmatprep.subr.bf16.mxu0 %v4497_v50  ;;  %2455 = vmatprep.subr.bf16.mxu1 %v4502_v40 }
 0x620   :  { %2415 = vmatpush1.bf16.msra.mxu0 %v4509_v4  ;;  %2456 = vmatpush1.bf16.msra.mxu1 %v4514_v42 }
 0x621   :  { %2416 = vmatprep.subr.bf16.mxu0 %v4521_v28  ;;  %2457 = vmatprep.subr.bf16.mxu1 %v4526_v41 }
 0x624   :  { %2417 = vmatpush1.bf16.msra.mxu0 %v4533_v53  ;;  %2458 = vmatpush1.bf16.msra.mxu1 %v4538_v63 }
 0x625   :  { %2418 = vmatprep.subr.bf16.mxu0 %v4545_v31  ;;  %2459 = vmatprep.subr.bf16.mxu1 %v4550_v29 }
 0x628   :  { %2419 = vmatpush1.bf16.msra.mxu0 %v4557_v30  ;;  %2460 = vmatpush1.bf16.msra.mxu1 %v4562_v47 }
 0x629   :  { %2420 = vmatprep.subr.bf16.mxu0 %v4569_v35  ;;  %2461 = vmatprep.subr.bf16.mxu1 %v4574_v36 }
 0x62c   :  { %2421 = vmatpush1.bf16.msra.mxu0 %v4581_v37  ;;  %2462 = vmatpush1.bf16.msra.mxu1 %v4586_v52 }
 0x62d   :  { %2718 = vmatprep.subr.bf16.mxu0 %v4403_v46  ;;  %2759 = vmatprep.subr.bf16.mxu1 %v4408_v33 }
 0x6cf   :  { %v2128_v23 = vpop.f32.mrf.mxu0  ;;  %v2169_v1 = vpop.f32.mrf.mxu1 }
 0x6d0   :  { %v2176_v3 = vadd.f32 %v2128_v23, %v4786_v2  ;;  %v2178_v20 = vadd.f32 %v2169_v1, %v4789_v18 }
 0x6d1   :  { %v2130_v5 = vpop.f32.mrf.mxu0  ;;  %v2171_v6 = vpop.f32.mrf.mxu1 }
 0x6d2   :  { %v3376_v7 = vmul.f32 -1.442695, %v2176_v3  ;;  %v2177_v9 = vadd.f32 %v2130_v5, %v4787_v8  ;;  %v2179_v17 = vadd.f32 %v2171_v6, %v4788_v16  ;;  %v4790_v8 = vld [vmem:[#allocation9_spill] sm:$0xff] }
 0x6d3   :  { %v2132_v10 = vpop.f32.mrf.mxu0  ;;  %v2173_v12 = vpop.f32.mrf.mxu1 }
 0x6d4   :  { %3726 = vpow2.f32 %v3376_v7  ;;  %v3377_v13 = vmul.f32 -1.442695, %v2177_v9  ;;  %v3378_v21 = vmul.f32 -1.442695, %v2179_v17 }
 0x6d5   :  { %v2133_v14 = vpop.f32.mrf.mxu0  ;;  %v2174_v15 = vpop.f32.mrf.mxu1 }
 0x6d6   :  { %3728 = vpow2.f32 %v3377_v13  ;;  %v4791_v14 = vld [vmem:[#allocation10_spill] sm:$0xff] }
 0x6d7   :  { %3730 = vtanh.f32 %v2178_v20 }
 0x6d8   :  { %3732 = vpow2.f32 %v3378_v21 }
 0x6e1   :  { %v3727_v22 = vpop.eup %3726 }
 0x6e2   :  { %v2183_v24 = vadd.f32 1.0, %v3727_v22  ;;  %v4792_v22 = vld [vmem:[#allocation20_spill] sm:$0xff] }
 0x6e3   :  { %v3729_v25 = vpop.eup %3728 }
 0x6e4   :  { %3734 = vrcp.f32 %v2183_v24  ;;  %v2189_v26 = vadd.f32 1.0, %v3729_v25  ;;  %v3731_v44 = vpop.eup %3730  ;;  %v4793_v24 = vld [vmem:[#allocation19_spill] sm:$0xff] }
 0x6e5   :  { %v3733_v57 = vpop.eup %3732 }
 0x6e6   :  { %3736 = vrcp.f32 %v2189_v26  ;;  %v2196_v0 = vadd.f32 1.0, %v3733_v57 }
 0x6e8   :  { %3738 = vrcp.f32 %v2196_v0 }
 0x6f1   :  { %v3735_v59 = vpop.eup %3734 }
 0x6f2   :  { %v2200_v61 = vmul.f32 %v3735_v59, %v3731_v44 }
 0x6f3   :  { %v3737_v62 = vpop.eup %3736 }
 0x6f4   :  { %v2199_v23 = vmul.f32 %v3737_v62, %v4599_v60 }
 0x6f5   :  { %v3739_v1 = vpop.eup %3738 }
 0x6f6   :  { %v4644_v2 = vadd.f32 %v2200_v61, %v2199_v23 }
 0x6f8   :  { %3740 = vtanh.f32 %v4644_v2 }
 0x705   :  { %v3741_v3 = vpop.eup %3740 }
 0x706   :  { %v2203_v5 = vmul.f32 %v3741_v3, %v3739_v1 }
 0x708   :  { %3379 = vst [vmem:[%s4756_s7 + $0x20] sm:$0xff] %v2203_v5  ;;  %v2213_v6 = vpack.c.bf16 %v2203_v5, %v2203_v5 }
 0x70a   :  { %2439 = vmatmul.mubr.bf16.vlgmr.msra.gmra.mxu0 %v2213_v6  ;;  %2480 = vmatmul.mubr.bf16.vlgmr.msra.gmra.mxu1 %v2213_v6 }
 0x70b   :  { %2719 = vmatpush1.bf16.msra.mxu0 %v4413_v43  ;;  %2760 = vmatpush1.bf16.msra.mxu1 %v4418_v56 }
 0x70c   :  { %2720 = vmatprep.subr.bf16.mxu0 %v4427_v19  ;;  %2761 = vmatprep.subr.bf16.mxu1 %v4432_v11 }
 0x70d   :  { %2750 = vmatprep.mubr.bf16.mxu0 %v4775_v49  ;;  %2791 = vmatprep.mubr.bf16.mxu1 %v4775_v49 }
 0x70f   :  { %2721 = vmatpush1.bf16.msra.mxu0 %v4437_v39  ;;  %2762 = vmatpush1.bf16.msra.mxu1 %v4442_v58 }
 0x710   :  { %2722 = vmatprep.subr.bf16.mxu0 %v4451_v32  ;;  %2763 = vmatprep.subr.bf16.mxu1 %v4456_v51 }
 0x713   :  { %2723 = vmatpush1.bf16.msra.mxu0 %v4461_v48  ;;  %2764 = vmatpush1.bf16.msra.mxu1 %v4466_v34 }
 0x714   :  { %2724 = vmatprep.subr.bf16.mxu0 %v4475_v54  ;;  %2765 = vmatprep.subr.bf16.mxu1 %v4480_v55 }
 0x717   :  { %2725 = vmatpush1.bf16.msra.mxu0 %v4485_v45  ;;  %2766 = vmatpush1.bf16.msra.mxu1 %v4490_v27 }
 0x718   :  { %2726 = vmatprep.subr.bf16.mxu0 %v4497_v50  ;;  %2767 = vmatprep.subr.bf16.mxu1 %v4502_v40 }
 0x71b   :  { %2727 = vmatpush1.bf16.msra.mxu0 %v4509_v4  ;;  %2768 = vmatpush1.bf16.msra.mxu1 %v4514_v42 }
 0x71c   :  { %2728 = vmatprep.subr.bf16.mxu0 %v4521_v28  ;;  %2769 = vmatprep.subr.bf16.mxu1 %v4526_v41 }
 0x71f   :  { %2729 = vmatpush1.bf16.msra.mxu0 %v4533_v53  ;;  %2770 = vmatpush1.bf16.msra.mxu1 %v4538_v63 }
 0x720   :  { %2730 = vmatprep.subr.bf16.mxu0 %v4545_v31  ;;  %2771 = vmatprep.subr.bf16.mxu1 %v4550_v29 }
 0x723   :  { %2731 = vmatpush1.bf16.msra.mxu0 %v4557_v30  ;;  %2772 = vmatpush1.bf16.msra.mxu1 %v4562_v47 }
 0x724   :  { %2732 = vmatprep.subr.bf16.mxu0 %v4569_v35  ;;  %2773 = vmatprep.subr.bf16.mxu1 %v4574_v36 }
 0x727   :  { %2733 = vmatpush1.bf16.msra.mxu0 %v4581_v37  ;;  %2774 = vmatpush1.bf16.msra.mxu1 %v4586_v52 }
 0x728   :  { %3030 = vmatprep.subr.bf16.mxu0 %v4403_v46  ;;  %3071 = vmatprep.subr.bf16.mxu1 %v4408_v33 }
 0x7ca   :  { %v2440_v60 = vpop.f32.mrf.mxu0  ;;  %v2481_v7 = vpop.f32.mrf.mxu1 }
 0x7cb   :  { %v2488_v9 = vadd.f32 %v2440_v60, %v4790_v8  ;;  %v2490_v33 = vadd.f32 %v2481_v7, %v4793_v24 }
 0x7cc   :  { %v2442_v10 = vpop.f32.mrf.mxu0  ;;  %v2483_v12 = vpop.f32.mrf.mxu1 }
 0x7cd   :  { %v3412_v13 = vmul.f32 -1.442695, %v2488_v9  ;;  %v2489_v15 = vadd.f32 %v2442_v10, %v4791_v14  ;;  %v2491_v46 = vadd.f32 %v2483_v12, %v4792_v22  ;;  %v4799_v22 = vld [vmem:[#allocation14_spill] sm:$0xff] }
 0x7ce   :  { %v2444_v16 = vpop.f32.mrf.mxu0  ;;  %v2485_v17 = vpop.f32.mrf.mxu1 }
 0x7cf   :  { %3742 = vpow2.f32 %v3412_v13  ;;  %v3413_v18 = vmul.f32 -1.442695, %v2489_v15  ;;  %v3414_v25 = vmul.f32 -1.442695, %v2491_v46  ;;  %v4798_v16 = vld [vmem:[#allocation13_spill] sm:$0xff] }
 0x7d0   :  { %v2445_v20 = vpop.f32.mrf.mxu0  ;;  %v2486_v21 = vpop.f32.mrf.mxu1 }
 0x7d1   :  { %3744 = vpow2.f32 %v3413_v18 }
 0x7d2   :  { %3746 = vtanh.f32 %v2490_v33 }
 0x7d3   :  { %3748 = vpow2.f32 %v3414_v25 }
 0x7dc   :  { %v3743_v26 = vpop.eup %3742 }
 0x7dd   :  { %v2495_v44 = vadd.f32 1.0, %v3743_v26 }
 0x7de   :  { %v3745_v57 = vpop.eup %3744 }
 0x7df   :  { %3750 = vrcp.f32 %v2495_v44  ;;  %v2501_v59 = vadd.f32 1.0, %v3745_v57  ;;  %v3747_v61 = vpop.eup %3746  ;;  %v4800_v57 = vld [vmem:[#allocation24_spill] sm:$0xff] }
 0x7e0   :  { %v3749_v62 = vpop.eup %3748 }
 0x7e1   :  { %3752 = vrcp.f32 %v2501_v59  ;;  %v2508_v3 = vadd.f32 1.0, %v3749_v62  ;;  %v611_v59 = vadd.f32 %v4800_v57, %v4213_v38  ;;  %v4801_v62 = vld [vmem:[#allocation23_spill] sm:$0xff] }
 0x7e3   :  { %3754 = vrcp.f32 %v2508_v3 }
 0x7ec   :  { %v3751_v0 = vpop.eup %3750 }
 0x7ed   :  { %v2512_v23 = vmul.f32 %v3751_v0, %v3747_v61 }
 0x7ee   :  { %v3753_v1 = vpop.eup %3752 }
 0x7ef   :  { %v2511_v5 = vmul.f32 %v3753_v1, %v4644_v2 }
 0x7f0   :  { %v3755_v60 = vpop.eup %3754 }
 0x7f1   :  { %v4689_v6 = vadd.f32 %v2512_v23, %v2511_v5 }
 0x7f3   :  { %3756 = vtanh.f32 %v4689_v6 }
 0x800   :  { %v3757_v7 = vpop.eup %3756 }
 0x801   :  { %v2515_v8 = vmul.f32 %v3757_v7, %v3755_v60 }
 0x803   :  { %3415 = vst [vmem:[%s4756_s7 + $0x28] sm:$0xff] %v2515_v8  ;;  %v2525_v9 = vpack.c.bf16 %v2515_v8, %v2515_v8 }
 0x805   :  { %2751 = vmatmul.mubr.bf16.vlgmr.msra.gmra.mxu0 %v2525_v9  ;;  %2792 = vmatmul.mubr.bf16.vlgmr.msra.gmra.mxu1 %v2525_v9 }
 0x806   :  { %3031 = vmatpush1.bf16.msra.mxu0 %v4413_v43  ;;  %3072 = vmatpush1.bf16.msra.mxu1 %v4418_v56  ;;  %v4794_v56 = vld [vmem:[#allocation11_spill] sm:$0xff] }
 0x807   :  { %3032 = vmatprep.subr.bf16.mxu0 %v4427_v19  ;;  %3073 = vmatprep.subr.bf16.mxu1 %v4432_v11 }
 0x808   :  { %3062 = vmatprep.mubr.bf16.mxu0 %v4775_v49  ;;  %3103 = vmatprep.mubr.bf16.mxu1 %v4775_v49 }
 0x80a   :  { %3033 = vmatpush1.bf16.msra.mxu0 %v4437_v39  ;;  %3074 = vmatpush1.bf16.msra.mxu1 %v4442_v58 }
 0x80b   :  { %3034 = vmatprep.subr.bf16.mxu0 %v4451_v32  ;;  %3075 = vmatprep.subr.bf16.mxu1 %v4456_v51  ;;  %v4795_v32 = vld [vmem:[#allocation12_spill] sm:$0xff] }
 0x80e   :  { %3035 = vmatpush1.bf16.msra.mxu0 %v4461_v48  ;;  %3076 = vmatpush1.bf16.msra.mxu1 %v4466_v34 }
 0x80f   :  { %3036 = vmatprep.subr.bf16.mxu0 %v4475_v54  ;;  %3077 = vmatprep.subr.bf16.mxu1 %v4480_v55 }
 0x812   :  { %3037 = vmatpush1.bf16.msra.mxu0 %v4485_v45  ;;  %3078 = vmatpush1.bf16.msra.mxu1 %v4490_v27  ;;  %v4796_v27 = vld [vmem:[#allocation22_spill] sm:$0xff] }
 0x813   :  { %3038 = vmatprep.subr.bf16.mxu0 %v4497_v50  ;;  %3079 = vmatprep.subr.bf16.mxu1 %v4502_v40  ;;  %v4797_v40 = vld [vmem:[#allocation21_spill] sm:$0xff] }
 0x816   :  { %3039 = vmatpush1.bf16.msra.mxu0 %v4509_v4  ;;  %3080 = vmatpush1.bf16.msra.mxu1 %v4514_v42 }
 0x817   :  { %3040 = vmatprep.subr.bf16.mxu0 %v4521_v28  ;;  %3081 = vmatprep.subr.bf16.mxu1 %v4526_v41 }
 0x81a   :  { %3041 = vmatpush1.bf16.msra.mxu0 %v4533_v53  ;;  %3082 = vmatpush1.bf16.msra.mxu1 %v4538_v63 }
 0x81b   :  { %3042 = vmatprep.subr.bf16.mxu0 %v4545_v31  ;;  %3083 = vmatprep.subr.bf16.mxu1 %v4550_v29 }
 0x81e   :  { %3043 = vmatpush1.bf16.msra.mxu0 %v4557_v30  ;;  %3084 = vmatpush1.bf16.msra.mxu1 %v4562_v47 }
 0x81f   :  { %3044 = vmatprep.subr.bf16.mxu0 %v4569_v35  ;;  %3085 = vmatprep.subr.bf16.mxu1 %v4574_v36 }
 0x822   :  { %3045 = vmatpush1.bf16.msra.mxu0 %v4581_v37  ;;  %3086 = vmatpush1.bf16.msra.mxu1 %v4586_v52 }
 0x8c5   :  { %v2752_v49 = vpop.f32.mrf.mxu0  ;;  %v2793_v43 = vpop.f32.mrf.mxu1 }
 0x8c6   :  { %v2800_v19 = vadd.f32 %v2752_v49, %v4794_v56  ;;  %v2802_v4 = vadd.f32 %v2793_v43, %v4797_v40 }
 0x8c7   :  { %v2754_v11 = vpop.f32.mrf.mxu0  ;;  %v2795_v39 = vpop.f32.mrf.mxu1 }
 0x8c8   :  { %v3448_v58 = vmul.f32 -1.442695, %v2800_v19  ;;  %v2801_v51 = vadd.f32 %v2754_v11, %v4795_v32  ;;  %v2803_v50 = vadd.f32 %v2795_v39, %v4796_v27 }
 0x8c9   :  { %v2756_v48 = vpop.f32.mrf.mxu0  ;;  %v2797_v34 = vpop.f32.mrf.mxu1 }
 0x8ca   :  { %3758 = vpow2.f32 %v3448_v58  ;;  %v3449_v54 = vmul.f32 -1.442695, %v2801_v51  ;;  %v3450_v42 = vmul.f32 -1.442695, %v2803_v50 }
 0x8cb   :  { %v2757_v55 = vpop.f32.mrf.mxu0  ;;  %v2798_v45 = vpop.f32.mrf.mxu1 }
 0x8cc   :  { %3760 = vpow2.f32 %v3449_v54 }
 0x8cd   :  { %3762 = vtanh.f32 %v2802_v4 }
 0x8ce   :  { %3764 = vpow2.f32 %v3450_v42 }
 0x8d7   :  { %v3759_v28 = vpop.eup %3758 }
 0x8d8   :  { %v2807_v41 = vadd.f32 1.0, %v3759_v28 }
 0x8d9   :  { %v3761_v53 = vpop.eup %3760 }
 0x8da   :  { %3766 = vrcp.f32 %v2807_v41  ;;  %v2813_v63 = vadd.f32 1.0, %v3761_v53  ;;  %v3763_v31 = vpop.eup %3762 }
 0x8db   :  { %v3765_v29 = vpop.eup %3764 }
 0x8dc   :  { %3768 = vrcp.f32 %v2813_v63  ;;  %v2820_v36 = vadd.f32 1.0, %v3765_v29 }
 0x8de   :  { %3770 = vrcp.f32 %v2820_v36 }
 0x8e7   :  { %v3767_v30 = vpop.eup %3766 }
 0x8e8   :  { %v2824_v47 = vmul.f32 %v3767_v30, %v3763_v31 }
 0x8e9   :  { %v3769_v35 = vpop.eup %3768 }
 0x8ea   :  { %v2823_v37 = vmul.f32 %v3769_v35, %v4689_v6 }
 0x8eb   :  { %v3771_v2 = vpop.eup %3770 }
 0x8ec   :  { %v2825_v52 = vadd.f32 %v2824_v47, %v2823_v37 }
 0x8ee   :  { %3772 = vtanh.f32 %v2825_v52 }
 0x8fb   :  { %v3773_v10 = vpop.eup %3772 }
 0x8fc   :  { %v2827_v12 = vmul.f32 %v3773_v10, %v3771_v2 }
 0x8fe   :  { %3451 = vst [vmem:[%s4756_s7 + $0x30] sm:$0xff] %v2827_v12  ;;  %v2837_v13 = vpack.c.bf16 %v2827_v12, %v2827_v12 }
 0x900   :  { %3063 = vmatmul.mubr.bf16.vlgmr.msra.gmra.mxu0 %v2837_v13  ;;  %3104 = vmatmul.mubr.bf16.vlgmr.msra.gmra.mxu1 %v2837_v13 }
 0x9c0   :  { %v3064_v14 = vpop.f32.mrf.mxu0  ;;  %v3105_v15 = vpop.f32.mrf.mxu1 }
 0x9c1   :  { %v3112_v17 = vadd.f32 %v3064_v14, %v4798_v16  ;;  %v3114_v0 = vadd.f32 %v3105_v15, %v4801_v62 }
 0x9c2   :  { %v3066_v18 = vpop.f32.mrf.mxu0  ;;  %v3107_v20 = vpop.f32.mrf.mxu1 }
 0x9c3   :  { %v3484_v21 = vmul.f32 -1.442695, %v3112_v17  ;;  %v3113_v46 = vadd.f32 %v3066_v18, %v4799_v22  ;;  %v3115_v61 = vadd.f32 %v3107_v20, %v611_v59 }
 0x9c4   :  { %v3068_v24 = vpop.f32.mrf.mxu0  ;;  %v3109_v33 = vpop.f32.mrf.mxu1 }
 0x9c5   :  { %3774 = vpow2.f32 %v3484_v21  ;;  %v3485_v25 = vmul.f32 -1.442695, %v3113_v46  ;;  %v3486_v23 = vmul.f32 -1.442695, %v3115_v61 }
 0x9c6   :  { %v3069_v26 = vpop.f32.mrf.mxu0  ;;  %v3110_v44 = vpop.f32.mrf.mxu1 }
 0x9c7   :  { %3776 = vpow2.f32 %v3485_v25 }
 0x9c8   :  { %3778 = vtanh.f32 %v3114_v0 }
 0x9c9   :  { %3780 = vpow2.f32 %v3486_v23 }
 0x9d2   :  { %v3775_v1 = vpop.eup %3774 }
 0x9d3   :  { %v3119_v3 = vadd.f32 1.0, %v3775_v1 }
 0x9d4   :  { %v3777_v5 = vpop.eup %3776 }
 0x9d5   :  { %3782 = vrcp.f32 %v3119_v3  ;;  %v3125_v6 = vadd.f32 1.0, %v3777_v5  ;;  %v3779_v60 = vpop.eup %3778 }
 0x9d6   :  { %v3781_v7 = vpop.eup %3780 }
 0x9d7   :  { %3784 = vrcp.f32 %v3125_v6  ;;  %v3132_v43 = vadd.f32 1.0, %v3781_v7 }
 0x9d9   :  { %3786 = vrcp.f32 %v3132_v43 }
 0x9e2   :  { %v3783_v8 = vpop.eup %3782 }
 0x9e3   :  { %v3136_v9 = vmul.f32 %v3783_v8, %v3779_v60 }
 0x9e4   :  { %v3785_v49 = vpop.eup %3784 }
 0x9e5   :  { %v3135_v56 = vmul.f32 %v3785_v49, %v2825_v52 }
 0x9e6   :  { %v3787_v19 = vpop.eup %3786 }
 0x9e7   :  { %v3137_v38 = vadd.f32 %v3136_v9, %v3135_v56 }
 0x9e9   :  { %3788 = vtanh.f32 %v3137_v38  ;;  %3148 = vst [vmem:[%s4757_s9] sm:$0xff] %v3137_v38 }
 0x9f6   :  { %v3789_v11 = vpop.eup %3788 }
 0x9f7   :  { %v3139_v39 = vmul.f32 %v3789_v11, %v3787_v19 }
 0x9f9   :  { %3487 = vst [vmem:[%s4756_s7 + $0x38] sm:$0xff] %v3139_v39  ;;  %3147 = vst [vmem:[%s4758_s8] sm:$0xff] %v3139_v39 }

</bundles_post_ra>
